<compile_context>
chip_gen: v5e
topology: v5e:2x2
jax: 0.10.0
libtpu: 0.0.40
codegen_flags: <defaults>
</compile_context>

<pallas_src>
import jax
import jax.numpy as jnp
from jax.experimental import pallas as pl
from jax.experimental.pallas import tpu as pltpu


def _round_up(a, m):
    return (a + m - 1) // m * m


def _disc_kernel(x_ref, w1_ref, b1_ref, w2_ref, b2_ref, w3_ref, b3_ref, out_ref):
    # x_ref: (TB, D_in) f32 tile; weights fully resident in VMEM; b3 in SMEM.
    x = x_ref[...].astype(jnp.bfloat16)  # in-kernel cast: saves an HBM round trip

    # Linear 1 (bf16 MXU, f32 accumulate) + LeakyReLU(0.2) in f32
    h1 = jnp.dot(x, w1_ref[...], preferred_element_type=jnp.float32) + b1_ref[...]
    h1 = jnp.where(h1 > 0, h1, 0.2 * h1)

    # Linear 2 (bf16 MXU, f32 accumulate) + LeakyReLU(0.2) in f32
    h2 = (
        jnp.dot(h1.astype(jnp.bfloat16), w2_ref[...], preferred_element_type=jnp.float32)
        + b2_ref[...]
    )
    h2 = jnp.where(h2 > 0, h2, 0.2 * h2)

    # Linear 3 has N=1: VPU multiply + lane (XLU) reduction instead of wasting
    # the MXU systolic array on a single output column.
    h3 = jnp.sum(h2 * w3_ref[...], axis=-1, keepdims=True) + b3_ref[0]

    # Sigmoid (EUP) — numerically stable formulation.
    out_ref[...] = jax.nn.sigmoid(h3)


def discriminator_forward(x, params, *, batch_tile=512):
    """x: (B, 4, msk, msk) float32. Returns validity of shape (B, 1) float32."""
    w1, b1, w2, b2, w3, b3 = params
    B = x.shape[0]
    x_flat = x.reshape(B, -1)  # same as torch x.view(x.size(0), -1); layout no-op
    d_in = x_flat.shape[1]
    h1_dim = w1.shape[1]
    h2_dim = w2.shape[1]

    # Keep the batch tile a multiple of 16 (bf16 intermediates pack 16 sublanes).
    batch_tile = max(16, (int(batch_tile) // 16) * 16)
    tb = min(batch_tile, _round_up(B, 16))
    b_pad = _round_up(B, tb)
    if b_pad != B:
        x_flat = jnp.pad(x_flat, ((0, b_pad - B), (0, 0)))
    x_flat = x_flat.astype(jnp.float32)

    # Weights cast once to bf16 (resident in VMEM across grid steps); biases and
    # the w3 row stay f32 for the VPU epilogue.
    w1_bf = w1.astype(jnp.bfloat16)
    w2_bf = w2.astype(jnp.bfloat16)
    w3_row = w3.reshape(1, h2_dim).astype(jnp.float32)   # (1, 256) VPU broadcast row
    b1_r = b1.reshape(1, h1_dim).astype(jnp.float32)
    b2_r = b2.reshape(1, h2_dim).astype(jnp.float32)
    b3_s = b3.reshape(-1).astype(jnp.float32)             # (1,) scalar -> SMEM

    grid = (b_pad // tb,)

    flops = 2 * b_pad * (d_in * h1_dim + h1_dim * h2_dim + h2_dim)
    bytes_accessed = (
        x_flat.size * 4                      # activation read (f32, single pass)
        + w1_bf.size * 2 + w2_bf.size * 2    # bf16 weights
        + (w3_row.size + b1_r.size + b2_r.size + b3_s.size) * 4
        + b_pad * 4                          # output
    )
    cost = pl.CostEstimate(
        flops=flops, transcendentals=b_pad, bytes_accessed=bytes_accessed
    )

    out = pl.pallas_call(
        _disc_kernel,
        out_shape=jax.ShapeDtypeStruct((b_pad, 1), jnp.float32),
        grid_spec=pltpu.PrefetchScalarGridSpec(
            num_scalar_prefetch=0,
            grid=grid,
            in_specs=[
                pl.BlockSpec((tb, d_in), lambda i: (i, 0)),        # x tile (f32)
                pl.BlockSpec((d_in, h1_dim), lambda i: (0, 0)),    # w1 (bf16)
                pl.BlockSpec((1, h1_dim), lambda i: (0, 0)),       # b1 (f32)
                pl.BlockSpec((h1_dim, h2_dim), lambda i: (0, 0)),  # w2 (bf16)
                pl.BlockSpec((1, h2_dim), lambda i: (0, 0)),       # b2 (f32)
                pl.BlockSpec((1, h2_dim), lambda i: (0, 0)),       # w3 row (f32, VPU)
                pl.BlockSpec(memory_space=pltpu.MemorySpace.SMEM), # b3 scalar
            ],
            out_specs=pl.BlockSpec((tb, 1), lambda i: (i, 0)),
        ),
        compiler_params=pltpu.CompilerParams(
            dimension_semantics=("parallel",),
            vmem_limit_bytes=48 * 1024 * 1024,
        ),
        cost_estimate=cost,
    )(x_flat, w1_bf, b1_r, w2_bf, b2_r, w3_row, b3_s)

    return out[:B]


def init_params(key, d_in):
    """Deterministic init mimicking nn.Linear default (uniform +-1/sqrt(fan_in)).
    Weights stored as (in, out)."""
    ks = jax.random.split(key, 6)

    def lin(kw, kb, fan_in, fan_out):
        bound = 1.0 / jnp.sqrt(fan_in)
        w = jax.random.uniform(kw, (fan_in, fan_out), jnp.float32, -bound, bound)
        b = jax.random.uniform(kb, (1, fan_out), jnp.float32, -bound, bound)
        return w, b

    w1, b1 = lin(ks[0], ks[1], d_in, 512)
    w2, b2 = lin(ks[2], ks[3], 512, 256)
    w3, b3 = lin(ks[4], ks[5], 256, 1)
    return (w1, b1, w2, b2, w3, b3)


def reference_forward(x, params):
    """Pure-JAX reference of the same math (bf16 matmuls, f32 accumulate)."""
    w1, b1, w2, b2, w3, b3 = params
    xf = x.reshape(x.shape[0], -1).astype(jnp.bfloat16)
    h = jnp.dot(xf, w1.astype(jnp.bfloat16), preferred_element_type=jnp.float32) + b1
    h = jnp.where(h > 0, h, 0.2 * h)
    h = jnp.dot(h.astype(jnp.bfloat16), w2.astype(jnp.bfloat16),
                preferred_element_type=jnp.float32) + b2
    h = jnp.where(h > 0, h, 0.2 * h)
    h = jnp.sum(h * w3.reshape(1, -1), axis=-1, keepdims=True) + b3.reshape(1, 1)
    return jax.nn.sigmoid(h)


if __name__ == "__main__":
    msk_shape = 16                 # spatial size -> d_in = 4 * 16 * 16 = 1024
    B = 2                          # small batch; kernel pads to its tile internally
    d_in = 4 * msk_shape ** 2

    key = jax.random.PRNGKey(0)
    kx, kp = jax.random.split(key)
    x = jax.random.normal(kx, (B, 4, msk_shape, msk_shape), jnp.float32)
    params = init_params(kp, d_in)

    out = discriminator_forward(x, params)
    out = jax.block_until_ready(out)

    ref = reference_forward(x, params)
    assert out.shape == (B, 1)
    assert jnp.allclose(out, ref, atol=1e-3, rtol=1e-3), (out, ref)

    print("KERNEL_OK")
</pallas_src>

<mosaic_0001>
module attributes {stable_mosaic.version = 11 : i64} {
  func.func @_disc_kernel(%arg0: i32, %arg1: memref<16x1024xf32, #tpu.memory_space<vmem>>, %arg2: memref<1024x512xbf16, #tpu.memory_space<vmem>>, %arg3: memref<1x512xf32, #tpu.memory_space<vmem>>, %arg4: memref<512x256xbf16, #tpu.memory_space<vmem>>, %arg5: memref<1x256xf32, #tpu.memory_space<vmem>>, %arg6: memref<1x256xf32, #tpu.memory_space<vmem>>, %arg7: memref<1xf32, #tpu.memory_space<smem>>, %arg8: memref<16x1xf32, #tpu.memory_space<vmem>>) attributes {dimension_semantics = [#tpu.dimension_semantics<parallel>], iteration_bounds = array<i64: 1>, scalar_prefetch = 0 : i64, scratch_operands = 0 : i64, tpu.core_type = #tpu.core_type<tc>, window_params = [{transform_indices = @transform_0, window_bounds = array<i64: 16, 1024>}, {pipeline_mode = #tpu.pipeline_mode<synchronous>, transform_indices = @transform_1, window_bounds = array<i64: 1024, 512>}, {pipeline_mode = #tpu.pipeline_mode<synchronous>, transform_indices = @transform_2, window_bounds = array<i64: 1, 512>}, {pipeline_mode = #tpu.pipeline_mode<synchronous>, transform_indices = @transform_3, window_bounds = array<i64: 512, 256>}, {pipeline_mode = #tpu.pipeline_mode<synchronous>, transform_indices = @transform_4, window_bounds = array<i64: 1, 256>}, {pipeline_mode = #tpu.pipeline_mode<synchronous>, transform_indices = @transform_5, window_bounds = array<i64: 1, 256>}, {transform_indices = @transform_6, window_bounds = array<i64: 1>}, {transform_indices = @transform_7, window_bounds = array<i64: 16, 1>}]} {
    %c0 = arith.constant 0 : index
    %c0_0 = arith.constant 0 : index
    %0 = vector.load %arg1[%c0, %c0_0] : memref<16x1024xf32, #tpu.memory_space<vmem>>, vector<16x1024xf32>
    %1 = arith.truncf %0 : vector<16x1024xf32> to vector<16x1024xbf16>
    %c0_1 = arith.constant 0 : index
    %c0_2 = arith.constant 0 : index
    %2 = vector.load %arg2[%c0_1, %c0_2] : memref<1024x512xbf16, #tpu.memory_space<vmem>>, vector<1024x512xbf16>
    %cst = arith.constant dense<0.000000e+00> : vector<16x512xf32>
    %3 = tpu.matmul %1, %2, %cst {dimension_numbers = #tpu.dot_dimension_numbers<[1], [0], [0], [1], [0, 0, 1, 1], [], []>} : vector<16x1024xbf16>, vector<1024x512xbf16>, vector<16x512xf32> -> vector<16x512xf32>
    %c0_3 = arith.constant 0 : index
    %c0_4 = arith.constant 0 : index
    %4 = vector.load %arg3[%c0_3, %c0_4] : memref<1x512xf32, #tpu.memory_space<vmem>>, vector<1x512xf32>
    %5 = vector.broadcast %4 : vector<1x512xf32> to vector<16x512xf32>
    %6 = arith.addf %3, %5 : vector<16x512xf32>
    %cst_5 = arith.constant 0.000000e+00 : f32
    %7 = vector.broadcast %cst_5 : f32 to vector<16x512xf32>
    %8 = arith.cmpf ogt, %6, %7 : vector<16x512xf32>
    %cst_6 = arith.constant 2.000000e-01 : f32
    %9 = vector.broadcast %cst_6 : f32 to vector<16x512xf32>
    %10 = arith.mulf %9, %6 : vector<16x512xf32>
    %11 = arith.select %8, %6, %10 : vector<16x512xi1>, vector<16x512xf32>
    %12 = arith.truncf %11 : vector<16x512xf32> to vector<16x512xbf16>
    %c0_7 = arith.constant 0 : index
    %c0_8 = arith.constant 0 : index
    %13 = vector.load %arg4[%c0_7, %c0_8] : memref<512x256xbf16, #tpu.memory_space<vmem>>, vector<512x256xbf16>
    %cst_9 = arith.constant dense<0.000000e+00> : vector<16x256xf32>
    %14 = tpu.matmul %12, %13, %cst_9 {dimension_numbers = #tpu.dot_dimension_numbers<[1], [0], [0], [1], [0, 0, 1, 1], [], []>} : vector<16x512xbf16>, vector<512x256xbf16>, vector<16x256xf32> -> vector<16x256xf32>
    %c0_10 = arith.constant 0 : index
    %c0_11 = arith.constant 0 : index
    %15 = vector.load %arg5[%c0_10, %c0_11] : memref<1x256xf32, #tpu.memory_space<vmem>>, vector<1x256xf32>
    %16 = vector.broadcast %15 : vector<1x256xf32> to vector<16x256xf32>
    %17 = arith.addf %14, %16 : vector<16x256xf32>
    %cst_12 = arith.constant 0.000000e+00 : f32
    %18 = vector.broadcast %cst_12 : f32 to vector<16x256xf32>
    %19 = arith.cmpf ogt, %17, %18 : vector<16x256xf32>
    %cst_13 = arith.constant 2.000000e-01 : f32
    %20 = vector.broadcast %cst_13 : f32 to vector<16x256xf32>
    %21 = arith.mulf %20, %17 : vector<16x256xf32>
    %22 = arith.select %19, %17, %21 : vector<16x256xi1>, vector<16x256xf32>
    %c0_14 = arith.constant 0 : index
    %c0_15 = arith.constant 0 : index
    %23 = vector.load %arg6[%c0_14, %c0_15] : memref<1x256xf32, #tpu.memory_space<vmem>>, vector<1x256xf32>
    %24 = vector.broadcast %23 : vector<1x256xf32> to vector<16x256xf32>
    %25 = arith.mulf %22, %24 : vector<16x256xf32>
    %cst_16 = arith.constant dense<0.000000e+00> : vector<16xf32>
    %26 = vector.multi_reduction <add>, %25, %cst_16 [1] : vector<16x256xf32> to vector<16xf32>
    %27 = vector.shape_cast %26 : vector<16xf32> to vector<16x1xf32>
    %c0_17 = arith.constant 0 : index
    %28 = memref.load %arg7[%c0_17] : memref<1xf32, #tpu.memory_space<smem>>
    %29 = vector.broadcast %28 : f32 to vector<16x1xf32>
    %30 = arith.addf %27, %29 : vector<16x1xf32>
    %31 = arith.negf %30 : vector<16x1xf32>
    %32 = math.exp %31 : vector<16x1xf32>
    %cst_18 = arith.constant 1.000000e+00 : f32
    %33 = vector.broadcast %cst_18 : f32 to vector<16x1xf32>
    %34 = arith.addf %33, %32 : vector<16x1xf32>
    %35 = arith.divf %33, %34 : vector<16x1xf32>
    %c0_19 = arith.constant 0 : index
    %c0_20 = arith.constant 0 : index
    %36 = vector.load %arg8[%c0_19, %c0_20] : memref<16x1xf32, #tpu.memory_space<vmem>>, vector<16x1xf32>
    tpu.vector_store %arg8[%c0_19, %c0_20], %35 {strides = array<i32>} : memref<16x1xf32, #tpu.memory_space<vmem>>, vector<16x1xf32>,
    return
  }
  func.func @transform_0(%arg0: i32) -> (i32, i32) {
    %c0_i32 = arith.constant 0 : i32
    %c0_i32_0 = arith.constant 0 : i32
    return %arg0, %c0_i32 : i32, i32
  }
  func.func @transform_1(%arg0: i32) -> (i32, i32) {
    %c0_i32 = arith.constant 0 : i32
    %c0_i32_0 = arith.constant 0 : i32
    %c0_i32_1 = arith.constant 0 : i32
    return %c0_i32, %c0_i32_0 : i32, i32
  }
  func.func @transform_2(%arg0: i32) -> (i32, i32) {
    %c0_i32 = arith.constant 0 : i32
    %c0_i32_0 = arith.constant 0 : i32
    %c0_i32_1 = arith.constant 0 : i32
    return %c0_i32, %c0_i32_0 : i32, i32
  }
  func.func @transform_3(%arg0: i32) -> (i32, i32) {
    %c0_i32 = arith.constant 0 : i32
    %c0_i32_0 = arith.constant 0 : i32
    %c0_i32_1 = arith.constant 0 : i32
    return %c0_i32, %c0_i32_0 : i32, i32
  }
  func.func @transform_4(%arg0: i32) -> (i32, i32) {
    %c0_i32 = arith.constant 0 : i32
    %c0_i32_0 = arith.constant 0 : i32
    %c0_i32_1 = arith.constant 0 : i32
    return %c0_i32, %c0_i32_0 : i32, i32
  }
  func.func @transform_5(%arg0: i32) -> (i32, i32) {
    %c0_i32 = arith.constant 0 : i32
    %c0_i32_0 = arith.constant 0 : i32
    %c0_i32_1 = arith.constant 0 : i32
    return %c0_i32, %c0_i32_0 : i32, i32
  }
  func.func @transform_6(%arg0: i32) -> i32 {
    %c0_i32 = arith.constant 0 : i32
    %c0_i32_0 = arith.constant 0 : i32
    return %c0_i32 : i32
  }
  func.func @transform_7(%arg0: i32) -> (i32, i32) {
    %c0_i32 = arith.constant 0 : i32
    %c0_i32_0 = arith.constant 0 : i32
    return %arg0, %c0_i32 : i32, i32
  }
}

</mosaic_0001>

<bundles_post_ra>
// kernel: tpu_custom_call.1
= control target key start
LH: loop header
LB: loop body
LE: loop exit
PB: predicated region body
PF: predicated region fallthrough
CT: control target
= control target key end

     0   :  { %13 = vsyncpa [#allocation4], 0  ;;  %s4629_s0 = inlined_call_operand.hbm [shape: f32[16,1024], index: 0, kind: input, shape index: {}]   ;;  %s4630_s1 = inlined_call_operand.hbm [shape: bf16[1024,512], index: 1, kind: input, shape index: {}]   ;;  %s4631_s2 = inlined_call_operand.hbm [shape: f32[1,512], index: 2, kind: input, shape index: {}]   ;;  %s4632_s3 = inlined_call_operand.hbm [shape: bf16[512,256], index: 3, kind: input, shape index: {}]   ;;  %s4633_s4 = inlined_call_operand.vmem [shape: f32[1,256], index: 4, kind: input, shape index: {}]   ;;  %s4634_s5 = inlined_call_operand.vmem [shape: f32[1,256], index: 5, kind: input, shape index: {}]   ;;  %s4635_s6 = inlined_call_operand.<no memory space> [shape: f32[1], index: 6, kind: input, shape index: {}]   ;;  %s4636_s7 = inlined_call_operand.vmem [shape: f32[16,1], index: 7, kind: output, shape index: {}]  }
   0x1   :  { %14 = vsyncpa [#allocation6], 0  ;;  %s33_s26 = sshll.u32 %s4630_s1, 4  ;;  %s34_s26 = int_to_ptr.hbm [resolvable:$true] %s33_s26 }
   0x2   :  { %15 = vsyncpa [#allocation9], 0  ;;  %s4438_s27 = smov [#allocation5]   ;;  %s20_s8 = sshll.u32 %s4629_s0, 4  ;;  %s21_s8 = int_to_ptr.hbm [resolvable:$true] %s20_s8 }
   0x3   :  { %s35_s28 = sshll.u32 %s4438_s27, 4  ;;  %s4439_s9 = smov 256   ;;  %s36_s28 = int_to_ptr.vmem [resolvable:$true] %s35_s28 }
   0x4   :  { %s4440_s10 = smov 16   ;;  %s4441_s11 = smov [#allocation3]  }
   0x5   :  { %41 = dma.hbm_to_vmem [thread:$0]  %s34_s26, 32768, %s36_s28, [#allocation6], %s4439_s9, %s4439_s9, %s4440_s10  }
   0x6   :  { %s22_s12 = sshll.u32 %s4441_s11, 4  ;;  %s4442_s13 = smov 1024   ;;  %s23_s12 = int_to_ptr.vmem [resolvable:$true] %s22_s12 }
   0x7   :  { %s4443_s14 = smov 64   ;;  %s47_s16 = sshll.u32 %s4631_s2, 4  ;;  %s48_s16 = int_to_ptr.hbm [resolvable:$true] %s47_s16 }
   0x8   :  { %28 = dma.hbm_to_vmem [thread:$0]  %s21_s8, 2048, %s23_s12, [#allocation4], %s4442_s13, %s4442_s13, %s4443_s14  }
   0x9   :  { %s4444_s17 = smov [#allocation7]   ;;  %s57_s20 = sshll.u32 %s4632_s3, 4  ;;  %s58_s20 = int_to_ptr.hbm [resolvable:$true] %s57_s20 }
   0xa   :  { %s49_s18 = sshll.u32 %s4444_s17, 4  ;;  %s4445_s21 = smov [#allocation8]   ;;  %s50_s18 = int_to_ptr.vmem [resolvable:$true] %s49_s18 }
   0xb   :  { %52 = dma.hbm_to_vmem [thread:$0]  %s48_s16, 64, %s50_s18, [#allocation6]  }
   0xc   :  { %s59_s22 = sshll.u32 %s4445_s21, 4  ;;  %s4446_s23 = smov 128   ;;  %s60_s22 = int_to_ptr.vmem [resolvable:$true] %s59_s22 }
   0xd   :  { %s4447_s24 = smov 8  }
   0xe   :  { %65 = dma.hbm_to_vmem [thread:$0]  %s58_s20, 8192, %s60_s22, [#allocation9], %s4446_s23, %s4446_s23, %s4447_s24  }
   0xf   :  { %4432 = dma.done.wait [#allocation4], 2048  }
  0x10   :  { %4433 = vsyncadd [#allocation4], 4294965248 }
  0x11   :  { %4434 = dma.done.wait [#allocation6], 32832  }
  0x12   :  { %4435 = vsyncadd [#allocation6], 4294934464 }
  0x13   :  { %4436 = dma.done.wait [#allocation9], 8192  }
  0x14   :  { %4437 = vsyncadd [#allocation9], 4294959104  ;;  %v2830_v0 = vld [vmem:[#allocation5 + $0xe0] sm:$0xf]  ;;  %v4028_v1 = vld [vmem:[#allocation5 + $0xec] sm:$0xf0] }
  0x15   :  { %v2958_v2 = vld [vmem:[#allocation5 + $0x1e0] sm:$0xf]  ;;  %v2831_v3 = vor.u32 %v4028_v1, %v2830_v0  ;;  %v4060_v4 = vld [vmem:[#allocation5 + $0x1ec] sm:$0xf0]  ;;  %vm2706_vm14 = vcmask 7168  }
  0x16   :  { %v3086_v5 = vld [vmem:[#allocation5 + $0x2e0] sm:$0xf]  ;;  %v4092_v6 = vld [vmem:[#allocation5 + $0x2ec] sm:$0xf0]  ;;  %v2959_v7 = vor.u32 %v4060_v4, %v2958_v2 }
  0x17   :  { %v3087_v8 = vor.u32 %v4092_v6, %v3086_v5  ;;  %v3214_v9 = vld [vmem:[#allocation5 + $0x3e0] sm:$0xf]  ;;  %v4124_v10 = vld [vmem:[#allocation5 + $0x3ec] sm:$0xf0]  ;;  %1658 = vmatpush.bf16.msra.mxu0 %v2831_v3 }
  0x18   :  { %v2814_v11 = vld [vmem:[#allocation5 + $0xc0] sm:$0xf]  ;;  %v3215_v12 = vor.u32 %v4124_v10, %v3214_v9  ;;  %v4024_v13 = vld [vmem:[#allocation5 + $0xcc] sm:$0xf0]  ;;  %1672 = vmatpush.bf16.msra.mxu1 %v2959_v7 }
  0x19   :  { %v2942_v14 = vld [vmem:[#allocation5 + $0x1c0] sm:$0xf]  ;;  %v4056_v15 = vld [vmem:[#allocation5 + $0x1cc] sm:$0xf0]  ;;  %1686 = vmatpush.bf16.msra.mxu2 %v3087_v8  ;;  %v2815_v16 = vor.u32 %v4024_v13, %v2814_v11 }
  0x1a   :  { %v2943_v17 = vor.u32 %v4056_v15, %v2942_v14  ;;  %v3070_v18 = vld [vmem:[#allocation5 + $0x2c0] sm:$0xf]  ;;  %v4088_v19 = vld [vmem:[#allocation5 + $0x2cc] sm:$0xf0]  ;;  %1700 = vmatpush.bf16.msra.mxu3 %v3215_v12 }
  0x1b   :  { %v3198_v20 = vld [vmem:[#allocation5 + $0x3c0] sm:$0xf]  ;;  %v3071_v21 = vor.u32 %v4088_v19, %v3070_v18  ;;  %v4120_v22 = vld [vmem:[#allocation5 + $0x3cc] sm:$0xf0]  ;;  %1659 = vmatpush.bf16.msra.mxu0 %v2815_v16 }
  0x1c   :  { %v2798_v23 = vld [vmem:[#allocation5 + $0xa0] sm:$0xf]  ;;  %v4020_v24 = vld [vmem:[#allocation5 + $0xac] sm:$0xf0]  ;;  %v3199_v25 = vor.u32 %v4120_v22, %v3198_v20  ;;  %1673 = vmatpush.bf16.msra.mxu1 %v2943_v17 }
  0x1d   :  { %v2926_v26 = vld [vmem:[#allocation5 + $0x1a0] sm:$0xf]  ;;  %v4052_v27 = vld [vmem:[#allocation5 + $0x1ac] sm:$0xf0]  ;;  %v2799_v29 = vor.u32 %v4020_v24, %v2798_v23  ;;  %1687 = vmatpush.bf16.msra.mxu2 %v3071_v21 }
  0x1e   :  { %v3054_v28 = vld [vmem:[#allocation5 + $0x2a0] sm:$0xf]  ;;  %v4084_v30 = vld [vmem:[#allocation5 + $0x2ac] sm:$0xf0]  ;;  %v2927_v33 = vor.u32 %v4052_v27, %v2926_v26  ;;  %1701 = vmatpush.bf16.msra.mxu3 %v3199_v25 }
  0x1f   :  { %v3182_v31 = vld [vmem:[#allocation5 + $0x3a0] sm:$0xf]  ;;  %v4116_v32 = vld [vmem:[#allocation5 + $0x3ac] sm:$0xf0]  ;;  %v3055_v34 = vor.u32 %v4084_v30, %v3054_v28  ;;  %1660 = vmatpush.bf16.msra.mxu0 %v2799_v29 }
  0x20   :  { %v2782_v35 = vld [vmem:[#allocation5 + $0x80] sm:$0xf]  ;;  %v4016_v36 = vld [vmem:[#allocation5 + $0x8c] sm:$0xf0]  ;;  %v3183_v38 = vor.u32 %v4116_v32, %v3182_v31  ;;  %1674 = vmatpush.bf16.msra.mxu1 %v2927_v33 }
  0x21   :  { %v2910_v37 = vld [vmem:[#allocation5 + $0x180] sm:$0xf]  ;;  %v4048_v39 = vld [vmem:[#allocation5 + $0x18c] sm:$0xf0]  ;;  %v2783_v44 = vor.u32 %v4016_v36, %v2782_v35  ;;  %1688 = vmatpush.bf16.msra.mxu2 %v3055_v34 }
  0x22   :  { %v3038_v40 = vld [vmem:[#allocation5 + $0x280] sm:$0xf]  ;;  %v4080_v41 = vld [vmem:[#allocation5 + $0x28c] sm:$0xf0]  ;;  %v2911_v45 = vor.u32 %v4048_v39, %v2910_v37  ;;  %1702 = vmatpush.bf16.msra.mxu3 %v3183_v38 }
  0x23   :  { %v3166_v42 = vld [vmem:[#allocation5 + $0x380] sm:$0xf]  ;;  %v4112_v43 = vld [vmem:[#allocation5 + $0x38c] sm:$0xf0]  ;;  %v3039_v46 = vor.u32 %v4080_v41, %v3038_v40  ;;  %1661 = vmatpush.bf16.msra.mxu0 %v2783_v44 }
  0x24   :  { %v2766_v47 = vld [vmem:[#allocation5 + $0x60] sm:$0xf]  ;;  %v4012_v48 = vld [vmem:[#allocation5 + $0x6c] sm:$0xf0]  ;;  %v3167_v50 = vor.u32 %v4112_v43, %v3166_v42  ;;  %1675 = vmatpush.bf16.msra.mxu1 %v2911_v45 }
  0x25   :  { %v2894_v49 = vld [vmem:[#allocation5 + $0x160] sm:$0xf]  ;;  %v4044_v51 = vld [vmem:[#allocation5 + $0x16c] sm:$0xf0]  ;;  %v2767_v56 = vor.u32 %v4012_v48, %v2766_v47  ;;  %1689 = vmatpush.bf16.msra.mxu2 %v3039_v46 }
  0x26   :  { %v3022_v52 = vld [vmem:[#allocation5 + $0x260] sm:$0xf]  ;;  %v4076_v53 = vld [vmem:[#allocation5 + $0x26c] sm:$0xf0]  ;;  %v2895_v57 = vor.u32 %v4044_v51, %v2894_v49  ;;  %1703 = vmatpush.bf16.msra.mxu3 %v3167_v50 }
  0x27   :  { %v3150_v54 = vld [vmem:[#allocation5 + $0x360] sm:$0xf]  ;;  %v4108_v55 = vld [vmem:[#allocation5 + $0x36c] sm:$0xf0]  ;;  %v3023_v58 = vor.u32 %v4076_v53, %v3022_v52  ;;  %1662 = vmatpush.bf16.msra.mxu0 %v2767_v56 }
  0x28   :  { %v2750_v59 = vld [vmem:[#allocation5 + $0x40] sm:$0xf]  ;;  %v4008_v60 = vld [vmem:[#allocation5 + $0x4c] sm:$0xf0]  ;;  %v3151_v62 = vor.u32 %v4108_v55, %v3150_v54  ;;  %1676 = vmatpush.bf16.msra.mxu1 %v2895_v57 }
  0x29   :  { %v2878_v61 = vld [vmem:[#allocation5 + $0x140] sm:$0xf]  ;;  %v4040_v63 = vld [vmem:[#allocation5 + $0x14c] sm:$0xf0]  ;;  %v2751_v4 = vor.u32 %v4008_v60, %v2750_v59  ;;  %1690 = vmatpush.bf16.msra.mxu2 %v3023_v58 }
  0x2a   :  { %v3006_v0 = vld [vmem:[#allocation5 + $0x240] sm:$0xf]  ;;  %v4072_v1 = vld [vmem:[#allocation5 + $0x24c] sm:$0xf0]  ;;  %v2879_v5 = vor.u32 %v4040_v63, %v2878_v61  ;;  %1704 = vmatpush.bf16.msra.mxu3 %v3151_v62 }
  0x2b   :  { %v3134_v2 = vld [vmem:[#allocation5 + $0x340] sm:$0xf]  ;;  %v4104_v3 = vld [vmem:[#allocation5 + $0x34c] sm:$0xf0]  ;;  %v3007_v6 = vor.u32 %v4072_v1, %v3006_v0  ;;  %1663 = vmatpush.bf16.msra.mxu0 %v2751_v4 }
  0x2c   :  { %v2734_v7 = vld [vmem:[#allocation5 + $0x20] sm:$0xf]  ;;  %v4004_v8 = vld [vmem:[#allocation5 + $0x2c] sm:$0xf0]  ;;  %v3135_v10 = vor.u32 %v4104_v3, %v3134_v2  ;;  %1677 = vmatpush.bf16.msra.mxu1 %v2879_v5 }
  0x2d   :  { %v2862_v9 = vld [vmem:[#allocation5 + $0x120] sm:$0xf]  ;;  %v4036_v11 = vld [vmem:[#allocation5 + $0x12c] sm:$0xf0]  ;;  %v2735_v16 = vor.u32 %v4004_v8, %v2734_v7  ;;  %1691 = vmatpush.bf16.msra.mxu2 %v3007_v6  ;;  %v89_v6 = vld [vmem:[#allocation3 + $0x8] sm:$0xff] }
  0x2e   :  { %v2990_v12 = vld [vmem:[#allocation5 + $0x220] sm:$0xf]  ;;  %v4068_v13 = vld [vmem:[#allocation5 + $0x22c] sm:$0xf0]  ;;  %v2863_v19 = vor.u32 %v4036_v11, %v2862_v9  ;;  %1705 = vmatpush.bf16.msra.mxu3 %v3135_v10  ;;  %v97_v7 = vld [vmem:[#allocation3 + $0x48] sm:$0xff] }
  0x2f   :  { %v3118_v14 = vld [vmem:[#allocation5 + $0x320] sm:$0xf]  ;;  %v4100_v15 = vld [vmem:[#allocation5 + $0x32c] sm:$0xf0]  ;;  %v2991_v20 = vor.u32 %v4068_v13, %v2990_v12  ;;  %1664 = vmatpush.bf16.msra.mxu0 %v2735_v16  ;;  %v91_v8 = vld [vmem:[#allocation3 + $0x18] sm:$0xff]  ;;  %v4506_v10 = vpack.c.bf16 %v97_v7, %v89_v6 }
  0x30   :  { %v2718_v17 = vld [vmem:[#allocation5] sm:$0xf]  ;;  %v4000_v18 = vld [vmem:[#allocation5 + $0xc] sm:$0xf0]  ;;  %v3119_v24 = vor.u32 %v4100_v15, %v3118_v14  ;;  %1678 = vmatpush.bf16.msra.mxu1 %v2863_v19  ;;  %v99_v11 = vld [vmem:[#allocation3 + $0x58] sm:$0xff] }
  0x31   :  { %v2846_v21 = vld [vmem:[#allocation5 + $0x100] sm:$0xf]  ;;  %v4032_v22 = vld [vmem:[#allocation5 + $0x10c] sm:$0xf0]  ;;  %v2719_v31 = vor.u32 %v4000_v18, %v2718_v17  ;;  %1692 = vmatpush.bf16.msra.mxu2 %v2991_v20  ;;  %v4508_v17 = vpack.c.bf16 %v99_v11, %v91_v8 }
  0x32   :  { %v2974_v23 = vld [vmem:[#allocation5 + $0x200] sm:$0xf]  ;;  %v4064_v25 = vld [vmem:[#allocation5 + $0x20c] sm:$0xf0]  ;;  %v2847_v35 = vor.u32 %v4032_v22, %v2846_v21  ;;  %1706 = vmatpush.bf16.msra.mxu3 %v3119_v24 }
  0x33   :  { %v3102_v26 = vld [vmem:[#allocation5 + $0x300] sm:$0xf]  ;;  %v4096_v27 = vld [vmem:[#allocation5 + $0x30c] sm:$0xf0]  ;;  %v2975_v36 = vor.u32 %v4064_v25, %v2974_v23  ;;  %1665 = vmatpush.bf16.msra.mxu0 %v2719_v31 }
  0x34   :  { %v3342_v28 = vld [vmem:[#allocation5 + $0x4e0] sm:$0xf]  ;;  %v4156_v29 = vld [vmem:[#allocation5 + $0x4ec] sm:$0xf0]  ;;  %v3103_v39 = vor.u32 %v4096_v27, %v3102_v26  ;;  %1679 = vmatpush.bf16.msra.mxu1 %v2847_v35 }
  0x35   :  { %v3470_v30 = vld [vmem:[#allocation5 + $0x5e0] sm:$0xf]  ;;  %v4188_v32 = vld [vmem:[#allocation5 + $0x5ec] sm:$0xf0]  ;;  %v3343_v40 = vor.u32 %v4156_v29, %v3342_v28  ;;  %1693 = vmatpush.bf16.msra.mxu2 %v2975_v36 }
  0x36   :  { %v3598_v33 = vld [vmem:[#allocation5 + $0x6e0] sm:$0xf]  ;;  %v4220_v34 = vld [vmem:[#allocation5 + $0x6ec] sm:$0xf0]  ;;  %v3471_v43 = vor.u32 %v4188_v32, %v3470_v30  ;;  %1707 = vmatpush.bf16.msra.mxu3 %v3103_v39 }
  0x37   :  { %v3726_v37 = vld [vmem:[#allocation5 + $0x7e0] sm:$0xf]  ;;  %v4252_v38 = vld [vmem:[#allocation5 + $0x7ec] sm:$0xf0]  ;;  %v3599_v44 = vor.u32 %v4220_v34, %v3598_v33  ;;  %1714 = vmatpush.bf16.msrb.mxu0 %v3343_v40  ;;  %1680 = vmatmul.bf16.vlgmr.msra.gmra.mxu1 %v4506_v10 }
  0x38   :  { %v3326_v41 = vld [vmem:[#allocation5 + $0x4c0] sm:$0xf]  ;;  %v4152_v42 = vld [vmem:[#allocation5 + $0x4cc] sm:$0xf0]  ;;  %v3727_v48 = vor.u32 %v4252_v38, %v3726_v37  ;;  %1728 = vmatpush.bf16.msrb.mxu1 %v3471_v43 }
  0x39   :  { %v3454_v45 = vld [vmem:[#allocation5 + $0x5c0] sm:$0xf]  ;;  %v4184_v46 = vld [vmem:[#allocation5 + $0x5cc] sm:$0xf0]  ;;  %v3327_v55 = vor.u32 %v4152_v42, %v3326_v41  ;;  %1742 = vmatpush.bf16.msrb.mxu2 %v3599_v44  ;;  %1708 = vmatmul.bf16.vlgmr.msra.gmra.mxu3 %v4508_v17 }
  0x3a   :  { %v3582_v47 = vld [vmem:[#allocation5 + $0x6c0] sm:$0xf]  ;;  %v4216_v49 = vld [vmem:[#allocation5 + $0x6cc] sm:$0xf0]  ;;  %v3455_v60 = vor.u32 %v4184_v46, %v3454_v45  ;;  %1756 = vmatpush.bf16.msrb.mxu3 %v3727_v48 }
  0x3b   :  { %v3710_v50 = vld [vmem:[#allocation5 + $0x7c0] sm:$0xf]  ;;  %v4248_v51 = vld [vmem:[#allocation5 + $0x7cc] sm:$0xf0]  ;;  %v3583_v61 = vor.u32 %v4216_v49, %v3582_v47  ;;  %1715 = vmatpush.bf16.msrb.mxu0 %v3327_v55 }
  0x3c   :  { %v88_v52 = vld [vmem:[#allocation3] sm:$0xff]  ;;  %v90_v54 = vld [vmem:[#allocation3 + $0x10] sm:$0xff]  ;;  %v3711_v2 = vor.u32 %v4248_v51, %v3710_v50  ;;  %1729 = vmatpush.bf16.msrb.mxu1 %v3455_v60 }
  0x3d   :  { %v96_v53 = vld [vmem:[#allocation3 + $0x40] sm:$0xff]  ;;  %v4148_v57 = vld [vmem:[#allocation5 + $0x4ac] sm:$0xf0]  ;;  %1743 = vmatpush.bf16.msrb.mxu2 %v3583_v61 }
  0x3e   :  { %v3310_v56 = vld [vmem:[#allocation5 + $0x4a0] sm:$0xf]  ;;  %v4500_v58 = vpack.c.bf16 %v96_v53, %v88_v52  ;;  %v98_v59 = vld [vmem:[#allocation3 + $0x50] sm:$0xff]  ;;  %1757 = vmatpush.bf16.msrb.mxu3 %v3711_v2 }
  0x3f   :  { %v3438_v62 = vld [vmem:[#allocation5 + $0x5a0] sm:$0xf]  ;;  %v4180_v63 = vld [vmem:[#allocation5 + $0x5ac] sm:$0xf0]  ;;  %v4502_v1 = vpack.c.bf16 %v98_v59, %v90_v54  ;;  %v3311_v9 = vor.u32 %v4148_v57, %v3310_v56 }
  0x40   :  { %v3566_v0 = vld [vmem:[#allocation5 + $0x6a0] sm:$0xf]  ;;  %v4212_v3 = vld [vmem:[#allocation5 + $0x6ac] sm:$0xf0]  ;;  %1666 = vmatmul.bf16.vlgmr.msra.gmra.mxu0 %v4500_v58  ;;  %v3439_v12 = vor.u32 %v4180_v63, %v3438_v62 }
  0x41   :  { %v3694_v4 = vld [vmem:[#allocation5 + $0x7a0] sm:$0xf]  ;;  %v4244_v5 = vld [vmem:[#allocation5 + $0x7ac] sm:$0xf0]  ;;  %1694 = vmatmul.bf16.vlgmr.msra.gmra.mxu2 %v4502_v1  ;;  %v3567_v13 = vor.u32 %v4212_v3, %v3566_v0  ;;  %1716 = vmatpush.bf16.msrb.mxu0 %v3311_v9  ;;  %v4026_v9 = vld [vmem:[#allocation5 + $0xe4] sm:$0xf] }
  0x42   :  { %v3294_v14 = vld [vmem:[#allocation5 + $0x480] sm:$0xf]  ;;  %v4144_v15 = vld [vmem:[#allocation5 + $0x48c] sm:$0xf0]  ;;  %v3695_v18 = vor.u32 %v4244_v5, %v3694_v4  ;;  %1730 = vmatpush.bf16.msrb.mxu1 %v3439_v12  ;;  %v2832_v12 = vld [vmem:[#allocation5 + $0xf0] sm:$0xf0] }
  0x43   :  { %v3422_v16 = vld [vmem:[#allocation5 + $0x580] sm:$0xf]  ;;  %v4176_v19 = vld [vmem:[#allocation5 + $0x58c] sm:$0xf0]  ;;  %v3295_v24 = vor.u32 %v4144_v15, %v3294_v14  ;;  %1744 = vmatpush.bf16.msrb.mxu2 %v3567_v13  ;;  %v4058_v13 = vld [vmem:[#allocation5 + $0x1e4] sm:$0xf] }
  0x44   :  { %v3550_v20 = vld [vmem:[#allocation5 + $0x680] sm:$0xf]  ;;  %v4208_v21 = vld [vmem:[#allocation5 + $0x68c] sm:$0xf0]  ;;  %v3423_v25 = vor.u32 %v4176_v19, %v3422_v16  ;;  %1758 = vmatpush.bf16.msrb.mxu3 %v3695_v18  ;;  %v2960_v14 = vld [vmem:[#allocation5 + $0x1f0] sm:$0xf0] }
  0x45   :  { %v3678_v22 = vld [vmem:[#allocation5 + $0x780] sm:$0xf]  ;;  %v4240_v23 = vld [vmem:[#allocation5 + $0x78c] sm:$0xf0]  ;;  %v3551_v26 = vor.u32 %v4208_v21, %v3550_v20  ;;  %1717 = vmatpush.bf16.msrb.mxu0 %v3295_v24  ;;  %v4090_v15 = vld [vmem:[#allocation5 + $0x2e4] sm:$0xf] }
  0x46   :  { %v3278_v27 = vld [vmem:[#allocation5 + $0x460] sm:$0xf]  ;;  %v4140_v28 = vld [vmem:[#allocation5 + $0x46c] sm:$0xf0]  ;;  %v3679_v30 = vor.u32 %v4240_v23, %v3678_v22  ;;  %1731 = vmatpush.bf16.msrb.mxu1 %v3423_v25  ;;  %v3088_v16 = vld [vmem:[#allocation5 + $0x2f0] sm:$0xf0] }
  0x47   :  { %v3406_v29 = vld [vmem:[#allocation5 + $0x560] sm:$0xf]  ;;  %v4172_v31 = vld [vmem:[#allocation5 + $0x56c] sm:$0xf0]  ;;  %v3279_v36 = vor.u32 %v4140_v28, %v3278_v27  ;;  %1745 = vmatpush.bf16.msrb.mxu2 %v3551_v26  ;;  %v4122_v18 = vld [vmem:[#allocation5 + $0x3e4] sm:$0xf] }
  0x48   :  { %v3534_v32 = vld [vmem:[#allocation5 + $0x660] sm:$0xf]  ;;  %v4204_v33 = vld [vmem:[#allocation5 + $0x66c] sm:$0xf0]  ;;  %v3407_v37 = vor.u32 %v4172_v31, %v3406_v29  ;;  %1759 = vmatpush.bf16.msrb.mxu3 %v3679_v30  ;;  %v3216_v20 = vld [vmem:[#allocation5 + $0x3f0] sm:$0xf0]  ;;  %v2835_v29 = vor.u32 %v4026_v9, %v2832_v12 }
  0x49   :  { %v3662_v34 = vld [vmem:[#allocation5 + $0x760] sm:$0xf]  ;;  %v4236_v35 = vld [vmem:[#allocation5 + $0x76c] sm:$0xf0]  ;;  %v3535_v38 = vor.u32 %v4204_v33, %v3534_v32  ;;  %1718 = vmatpush.bf16.msrb.mxu0 %v3279_v36  ;;  %v93_v27 = vld [vmem:[#allocation3 + $0x28] sm:$0xff]  ;;  %v2963_v33 = vor.u32 %v4058_v13, %v2960_v14 }
  0x4a   :  { %v3262_v39 = vld [vmem:[#allocation5 + $0x440] sm:$0xf]  ;;  %v4136_v40 = vld [vmem:[#allocation5 + $0x44c] sm:$0xf0]  ;;  %v3663_v42 = vor.u32 %v4236_v35, %v3662_v34  ;;  %1732 = vmatpush.bf16.msrb.mxu1 %v3407_v37  ;;  %v101_v30 = vld [vmem:[#allocation3 + $0x68] sm:$0xff]  ;;  %v3091_v34 = vor.u32 %v4090_v15, %v3088_v16 }
  0x4b   :  { %v3390_v41 = vld [vmem:[#allocation5 + $0x540] sm:$0xf]  ;;  %v4168_v43 = vld [vmem:[#allocation5 + $0x54c] sm:$0xf0]  ;;  %v3263_v48 = vor.u32 %v4136_v40, %v3262_v39  ;;  %1746 = vmatpush.bf16.msrb.mxu2 %v3535_v38  ;;  %v95_v31 = vld [vmem:[#allocation3 + $0x38] sm:$0xff]  ;;  %v3219_v38 = vor.u32 %v4122_v18, %v3216_v20 }
  0x4c   :  { %v3518_v44 = vld [vmem:[#allocation5 + $0x640] sm:$0xf]  ;;  %v4200_v45 = vld [vmem:[#allocation5 + $0x64c] sm:$0xf0]  ;;  %v3391_v50 = vor.u32 %v4168_v43, %v3390_v41  ;;  %1760 = vmatpush.bf16.msrb.mxu3 %v3663_v42  ;;  %v103_v32 = vld [vmem:[#allocation3 + $0x78] sm:$0xff] }
  0x4d   :  { %v3646_v46 = vld [vmem:[#allocation5 + $0x740] sm:$0xf]  ;;  %v4232_v47 = vld [vmem:[#allocation5 + $0x74c] sm:$0xf0]  ;;  %v3519_v51 = vor.u32 %v4200_v45, %v3518_v44  ;;  %1719 = vmatpush.bf16.msrb.mxu0 %v3263_v48  ;;  %v4022_v35 = vld [vmem:[#allocation5 + $0xc4] sm:$0xf]  ;;  %v4516_v44 = vpack.c.bf16 %v101_v30, %v93_v27 }
  0x4e   :  { %v3246_v49 = vld [vmem:[#allocation5 + $0x420] sm:$0xf]  ;;  %v4132_v52 = vld [vmem:[#allocation5 + $0x42c] sm:$0xf0]  ;;  %v3647_v55 = vor.u32 %v4232_v47, %v3646_v46  ;;  %1733 = vmatpush.bf16.msrb.mxu1 %v3391_v50  ;;  %v2816_v36 = vld [vmem:[#allocation5 + $0xd0] sm:$0xf0]  ;;  %v4518_v47 = vpack.c.bf16 %v103_v32, %v95_v31 }
  0x4f   :  { %v3374_v53 = vld [vmem:[#allocation5 + $0x520] sm:$0xf]  ;;  %v4164_v54 = vld [vmem:[#allocation5 + $0x52c] sm:$0xf0]  ;;  %v3247_v63 = vor.u32 %v4132_v52, %v3246_v49  ;;  %1747 = vmatpush.bf16.msrb.mxu2 %v3519_v51  ;;  %v4054_v37 = vld [vmem:[#allocation5 + $0x1c4] sm:$0xf]  ;;  %v2819_v48 = vor.u32 %v4022_v35, %v2816_v36 }
  0x50   :  { %v3502_v56 = vld [vmem:[#allocation5 + $0x620] sm:$0xf]  ;;  %v4196_v57 = vld [vmem:[#allocation5 + $0x62c] sm:$0xf0]  ;;  %v3375_v5 = vor.u32 %v4164_v54, %v3374_v53  ;;  %1761 = vmatpush.bf16.msrb.mxu3 %v3647_v55  ;;  %v2944_v40 = vld [vmem:[#allocation5 + $0x1d0] sm:$0xf0] }
  0x51   :  { %v3630_v59 = vld [vmem:[#allocation5 + $0x720] sm:$0xf]  ;;  %v4228_v60 = vld [vmem:[#allocation5 + $0x72c] sm:$0xf0]  ;;  %v3503_v6 = vor.u32 %v4196_v57, %v3502_v56  ;;  %1720 = vmatpush.bf16.msrb.mxu0 %v3247_v63  ;;  %v4086_v41 = vld [vmem:[#allocation5 + $0x2c4] sm:$0xf]  ;;  %v2947_v49 = vor.u32 %v4054_v37, %v2944_v40 }
  0x52   :  { %v3230_v61 = vld [vmem:[#allocation5 + $0x400] sm:$0xf]  ;;  %v4128_v62 = vld [vmem:[#allocation5 + $0x40c] sm:$0xf0]  ;;  %v3631_v11 = vor.u32 %v4228_v60, %v3630_v59  ;;  %1734 = vmatpush.bf16.msrb.mxu1 %v3375_v5  ;;  %v3072_v42 = vld [vmem:[#allocation5 + $0x2d0] sm:$0xf0] }
  0x53   :  { %v3358_v0 = vld [vmem:[#allocation5 + $0x500] sm:$0xf]  ;;  %v4160_v2 = vld [vmem:[#allocation5 + $0x50c] sm:$0xf0]  ;;  %v3231_v19 = vor.u32 %v4128_v62, %v3230_v61  ;;  %1748 = vmatpush.bf16.msrb.mxu2 %v3503_v6  ;;  %v4118_v45 = vld [vmem:[#allocation5 + $0x3c4] sm:$0xf]  ;;  %v3075_v50 = vor.u32 %v4086_v41, %v3072_v42 }
  0x54   :  { %v3486_v3 = vld [vmem:[#allocation5 + $0x600] sm:$0xf]  ;;  %v4192_v4 = vld [vmem:[#allocation5 + $0x60c] sm:$0xf0]  ;;  %v3359_v23 = vor.u32 %v4160_v2, %v3358_v0  ;;  %1762 = vmatpush.bf16.msrb.mxu3 %v3631_v11  ;;  %v3200_v46 = vld [vmem:[#allocation5 + $0x3d0] sm:$0xf0] }
  0x55   :  { %v3614_v7 = vld [vmem:[#allocation5 + $0x700] sm:$0xf]  ;;  %v4224_v8 = vld [vmem:[#allocation5 + $0x70c] sm:$0xf0]  ;;  %v3487_v24 = vor.u32 %v4192_v4, %v3486_v3  ;;  %1721 = vmatpush.bf16.msrb.mxu0 %v3231_v19  ;;  %v4018_v51 = vld [vmem:[#allocation5 + $0xa4] sm:$0xf]  ;;  %v3203_v54 = vor.u32 %v4118_v45, %v3200_v46 }
  0x56   :  { %v92_v21 = vld [vmem:[#allocation3 + $0x20] sm:$0xff]  ;;  %v94_v25 = vld [vmem:[#allocation3 + $0x30] sm:$0xff]  ;;  %v3615_v28 = vor.u32 %v4224_v8, %v3614_v7  ;;  %1735 = vmatpush.bf16.msrb.mxu1 %v3359_v23 }
  0x57   :  { %v100_v22 = vld [vmem:[#allocation3 + $0x60] sm:$0xff]  ;;  %v102_v26 = vld [vmem:[#allocation3 + $0x70] sm:$0xff]  ;;  %1749 = vmatpush.bf16.msrb.mxu2 %v3487_v24 }
  0x58   :  { %v4512_v39 = vpack.c.bf16 %v100_v22, %v92_v21  ;;  %v4514_v43 = vpack.c.bf16 %v102_v26, %v94_v25  ;;  %1763 = vmatpush.bf16.msrb.mxu3 %v3615_v28  ;;  %v2800_v52 = vld [vmem:[#allocation5 + $0xb0] sm:$0xf0]  ;;  %v4050_v53 = vld [vmem:[#allocation5 + $0x1a4] sm:$0xf] }
  0x59   :  { %1770 = vmatpush.bf16.msra.mxu0 %v2835_v29  ;;  %v2928_v55 = vld [vmem:[#allocation5 + $0x1b0] sm:$0xf0]  ;;  %v4082_v56 = vld [vmem:[#allocation5 + $0x2a4] sm:$0xf]  ;;  %1736 = vmatmul.bf16.vlgmr.msrb.gmra.mxu1 %v4516_v44  ;;  %v2803_v61 = vor.u32 %v4018_v51, %v2800_v52 }
  0x5a   :  { %1784 = vmatpush.bf16.msra.mxu1 %v2963_v33  ;;  %1722 = vmatmul.bf16.vlgmr.msrb.gmra.mxu0 %v4512_v39  ;;  %v3056_v57 = vld [vmem:[#allocation5 + $0x2b0] sm:$0xf0]  ;;  %v4114_v59 = vld [vmem:[#allocation5 + $0x3a4] sm:$0xf]  ;;  %v2931_v62 = vor.u32 %v4050_v53, %v2928_v55 }
  0x5b   :  { %1798 = vmatpush.bf16.msra.mxu2 %v3091_v34  ;;  %v3184_v60 = vld [vmem:[#allocation5 + $0x3b0] sm:$0xf0]  ;;  %1764 = vmatmul.bf16.vlgmr.msrb.gmra.mxu3 %v4518_v47  ;;  %v3059_v63 = vor.u32 %v4082_v56, %v3056_v57  ;;  %v4014_v0 = vld [vmem:[#allocation5 + $0x84] sm:$0xf] }
  0x5c   :  { %1812 = vmatpush.bf16.msra.mxu3 %v3219_v38  ;;  %1750 = vmatmul.bf16.vlgmr.msrb.gmra.mxu2 %v4514_v43  ;;  %v2784_v2 = vld [vmem:[#allocation5 + $0x90] sm:$0xf0]  ;;  %v4046_v3 = vld [vmem:[#allocation5 + $0x184] sm:$0xf]  ;;  %v3187_v4 = vor.u32 %v4114_v59, %v3184_v60 }
  0x5d   :  { %1771 = vmatpush.bf16.msra.mxu0 %v2819_v48  ;;  %v2912_v5 = vld [vmem:[#allocation5 + $0x190] sm:$0xf0]  ;;  %v4078_v6 = vld [vmem:[#allocation5 + $0x284] sm:$0xf]  ;;  %v2787_v11 = vor.u32 %v4014_v0, %v2784_v2 }
  0x5e   :  { %1785 = vmatpush.bf16.msra.mxu1 %v2947_v49  ;;  %v3040_v7 = vld [vmem:[#allocation5 + $0x290] sm:$0xf0]  ;;  %v4110_v8 = vld [vmem:[#allocation5 + $0x384] sm:$0xf]  ;;  %v2915_v12 = vor.u32 %v4046_v3, %v2912_v5 }
  0x5f   :  { %1799 = vmatpush.bf16.msra.mxu2 %v3075_v50  ;;  %v3168_v9 = vld [vmem:[#allocation5 + $0x390] sm:$0xf0]  ;;  %v3043_v13 = vor.u32 %v4078_v6, %v3040_v7  ;;  %v4010_v14 = vld [vmem:[#allocation5 + $0x64] sm:$0xf] }
  0x60   :  { %1813 = vmatpush.bf16.msra.mxu3 %v3203_v54  ;;  %v2768_v15 = vld [vmem:[#allocation5 + $0x70] sm:$0xf0]  ;;  %v4042_v16 = vld [vmem:[#allocation5 + $0x164] sm:$0xf]  ;;  %v3171_v18 = vor.u32 %v4110_v8, %v3168_v9 }
  0x61   :  { %1772 = vmatpush.bf16.msra.mxu0 %v2803_v61  ;;  %v2896_v19 = vld [vmem:[#allocation5 + $0x170] sm:$0xf0]  ;;  %v4074_v20 = vld [vmem:[#allocation5 + $0x264] sm:$0xf]  ;;  %v2771_v24 = vor.u32 %v4010_v14, %v2768_v15 }
  0x62   :  { %1786 = vmatpush.bf16.msra.mxu1 %v2931_v62  ;;  %v3024_v21 = vld [vmem:[#allocation5 + $0x270] sm:$0xf0]  ;;  %v4106_v22 = vld [vmem:[#allocation5 + $0x364] sm:$0xf]  ;;  %v2899_v25 = vor.u32 %v4042_v16, %v2896_v19 }
  0x63   :  { %1800 = vmatpush.bf16.msra.mxu2 %v3059_v63  ;;  %v3152_v23 = vld [vmem:[#allocation5 + $0x370] sm:$0xf0]  ;;  %v3027_v26 = vor.u32 %v4074_v20, %v3024_v21  ;;  %v4006_v27 = vld [vmem:[#allocation5 + $0x44] sm:$0xf] }
  0x64   :  { %1814 = vmatpush.bf16.msra.mxu3 %v3187_v4  ;;  %v2752_v28 = vld [vmem:[#allocation5 + $0x50] sm:$0xf0]  ;;  %v4038_v29 = vld [vmem:[#allocation5 + $0x144] sm:$0xf]  ;;  %v3155_v30 = vor.u32 %v4106_v22, %v3152_v23 }
  0x65   :  { %1773 = vmatpush.bf16.msra.mxu0 %v2787_v11  ;;  %v2880_v31 = vld [vmem:[#allocation5 + $0x150] sm:$0xf0]  ;;  %v4070_v32 = vld [vmem:[#allocation5 + $0x244] sm:$0xf]  ;;  %v2755_v36 = vor.u32 %v4006_v27, %v2752_v28 }
  0x66   :  { %1787 = vmatpush.bf16.msra.mxu1 %v2915_v12  ;;  %v3008_v33 = vld [vmem:[#allocation5 + $0x250] sm:$0xf0]  ;;  %v4102_v34 = vld [vmem:[#allocation5 + $0x344] sm:$0xf]  ;;  %v2883_v37 = vor.u32 %v4038_v29, %v2880_v31 }
  0x67   :  { %1801 = vmatpush.bf16.msra.mxu2 %v3043_v13  ;;  %v3136_v35 = vld [vmem:[#allocation5 + $0x350] sm:$0xf0]  ;;  %v3011_v38 = vor.u32 %v4070_v32, %v3008_v33  ;;  %v4002_v40 = vld [vmem:[#allocation5 + $0x24] sm:$0xf] }
  0x68   :  { %1815 = vmatpush.bf16.msra.mxu3 %v3171_v18  ;;  %v2736_v41 = vld [vmem:[#allocation5 + $0x30] sm:$0xf0]  ;;  %v4034_v42 = vld [vmem:[#allocation5 + $0x124] sm:$0xf]  ;;  %v3139_v45 = vor.u32 %v4102_v34, %v3136_v35 }
  0x69   :  { %1774 = vmatpush.bf16.msra.mxu0 %v2771_v24  ;;  %v2864_v46 = vld [vmem:[#allocation5 + $0x130] sm:$0xf0]  ;;  %v4066_v48 = vld [vmem:[#allocation5 + $0x224] sm:$0xf]  ;;  %v2739_v52 = vor.u32 %v4002_v40, %v2736_v41 }
  0x6a   :  { %1788 = vmatpush.bf16.msra.mxu1 %v2899_v25  ;;  %v2992_v49 = vld [vmem:[#allocation5 + $0x230] sm:$0xf0]  ;;  %v4098_v50 = vld [vmem:[#allocation5 + $0x324] sm:$0xf]  ;;  %v2867_v55 = vor.u32 %v4034_v42, %v2864_v46 }
  0x6b   :  { %1802 = vmatpush.bf16.msra.mxu2 %v3027_v26  ;;  %v3120_v51 = vld [vmem:[#allocation5 + $0x330] sm:$0xf0]  ;;  %v3998_v53 = vld [vmem:[#allocation5 + $0x4] sm:$0xf]  ;;  %v2995_v56 = vor.u32 %v4066_v48, %v2992_v49 }
  0x6c   :  { %1816 = vmatpush.bf16.msra.mxu3 %v3155_v30  ;;  %v2720_v54 = vld [vmem:[#allocation5 + $0x10] sm:$0xf0]  ;;  %v4030_v57 = vld [vmem:[#allocation5 + $0x104] sm:$0xf]  ;;  %v3123_v61 = vor.u32 %v4098_v50, %v3120_v51 }
  0x6d   :  { %1775 = vmatpush.bf16.msra.mxu0 %v2755_v36  ;;  %v2848_v59 = vld [vmem:[#allocation5 + $0x110] sm:$0xf0]  ;;  %v4062_v60 = vld [vmem:[#allocation5 + $0x204] sm:$0xf]  ;;  %v2723_v5 = vor.u32 %v3998_v53, %v2720_v54 }
  0x6e   :  { %1789 = vmatpush.bf16.msra.mxu1 %v2883_v37  ;;  %v2976_v62 = vld [vmem:[#allocation5 + $0x210] sm:$0xf0]  ;;  %v4094_v63 = vld [vmem:[#allocation5 + $0x304] sm:$0xf]  ;;  %v2851_v9 = vor.u32 %v4030_v57, %v2848_v59 }
  0x6f   :  { %1803 = vmatpush.bf16.msra.mxu2 %v3011_v38  ;;  %v3104_v0 = vld [vmem:[#allocation5 + $0x310] sm:$0xf0]  ;;  %v4154_v2 = vld [vmem:[#allocation5 + $0x4e4] sm:$0xf]  ;;  %v2979_v11 = vor.u32 %v4062_v60, %v2976_v62 }
  0x70   :  { %1817 = vmatpush.bf16.msra.mxu3 %v3139_v45  ;;  %v3344_v3 = vld [vmem:[#allocation5 + $0x4f0] sm:$0xf0]  ;;  %v4186_v4 = vld [vmem:[#allocation5 + $0x5e4] sm:$0xf]  ;;  %v3107_v14 = vor.u32 %v4094_v63, %v3104_v0 }
  0x71   :  { %1776 = vmatpush.bf16.msra.mxu0 %v2739_v52  ;;  %v3472_v6 = vld [vmem:[#allocation5 + $0x5f0] sm:$0xf0]  ;;  %v4218_v7 = vld [vmem:[#allocation5 + $0x6e4] sm:$0xf]  ;;  %v3347_v15 = vor.u32 %v4154_v2, %v3344_v3 }
  0x72   :  { %v3600_v8 = vld [vmem:[#allocation5 + $0x6f0] sm:$0xf0]  ;;  %1790 = vmatpush.bf16.msra.mxu1 %v2867_v55  ;;  %v4250_v12 = vld [vmem:[#allocation5 + $0x7e4] sm:$0xf]  ;;  %v3475_v16 = vor.u32 %v4186_v4, %v3472_v6 }
  0x73   :  { %1804 = vmatpush.bf16.msra.mxu2 %v2995_v56  ;;  %v3728_v13 = vld [vmem:[#allocation5 + $0x7f0] sm:$0xf0]  ;;  %v3603_v18 = vor.u32 %v4218_v7, %v3600_v8  ;;  %v4150_v19 = vld [vmem:[#allocation5 + $0x4c4] sm:$0xf] }
  0x74   :  { %1818 = vmatpush.bf16.msra.mxu3 %v3123_v61  ;;  %v3328_v20 = vld [vmem:[#allocation5 + $0x4d0] sm:$0xf0]  ;;  %v4182_v21 = vld [vmem:[#allocation5 + $0x5c4] sm:$0xf]  ;;  %v3731_v22 = vor.u32 %v4250_v12, %v3728_v13 }
  0x75   :  { %1777 = vmatpush.bf16.msra.mxu0 %v2723_v5  ;;  %v3456_v23 = vld [vmem:[#allocation5 + $0x5d0] sm:$0xf0]  ;;  %v4214_v24 = vld [vmem:[#allocation5 + $0x6c4] sm:$0xf]  ;;  %v3331_v28 = vor.u32 %v4150_v19, %v3328_v20 }
  0x76   :  { %v3584_v25 = vld [vmem:[#allocation5 + $0x6d0] sm:$0xf0]  ;;  %1791 = vmatpush.bf16.msra.mxu1 %v2851_v9  ;;  %v4246_v26 = vld [vmem:[#allocation5 + $0x7c4] sm:$0xf]  ;;  %v3459_v29 = vor.u32 %v4182_v21, %v3456_v23 }
  0x77   :  { %1805 = vmatpush.bf16.msra.mxu2 %v2979_v11  ;;  %v3712_v27 = vld [vmem:[#allocation5 + $0x7d0] sm:$0xf0]  ;;  %v3587_v30 = vor.u32 %v4214_v24, %v3584_v25  ;;  %v4146_v31 = vld [vmem:[#allocation5 + $0x4a4] sm:$0xf] }
  0x78   :  { %1819 = vmatpush.bf16.msra.mxu3 %v3107_v14  ;;  %v3312_v32 = vld [vmem:[#allocation5 + $0x4b0] sm:$0xf0]  ;;  %v4178_v33 = vld [vmem:[#allocation5 + $0x5a4] sm:$0xf]  ;;  %v3715_v34 = vor.u32 %v4246_v26, %v3712_v27  ;;  %1778 = vmatmul.bf16.vlgmr.msra.gmra.mxu0 %v4500_v58 }
  0x79   :  { %1826 = vmatpush.bf16.msrb.mxu0 %v3347_v15  ;;  %v3440_v35 = vld [vmem:[#allocation5 + $0x5b0] sm:$0xf0]  ;;  %v4210_v36 = vld [vmem:[#allocation5 + $0x6a4] sm:$0xf]  ;;  %1792 = vmatmul.bf16.vlgmr.msra.gmra.mxu1 %v4506_v10  ;;  %v3315_v41 = vor.u32 %v4146_v31, %v3312_v32 }
  0x7a   :  { %1840 = vmatpush.bf16.msrb.mxu1 %v3475_v16  ;;  %v3568_v37 = vld [vmem:[#allocation5 + $0x6b0] sm:$0xf0]  ;;  %v4242_v38 = vld [vmem:[#allocation5 + $0x7a4] sm:$0xf]  ;;  %1806 = vmatmul.bf16.vlgmr.msra.gmra.mxu2 %v4502_v1  ;;  %v3443_v42 = vor.u32 %v4178_v33, %v3440_v35 }
  0x7b   :  { %1854 = vmatpush.bf16.msrb.mxu2 %v3603_v18  ;;  %v3696_v40 = vld [vmem:[#allocation5 + $0x7b0] sm:$0xf0]  ;;  %1820 = vmatmul.bf16.vlgmr.msra.gmra.mxu3 %v4508_v17  ;;  %v3571_v45 = vor.u32 %v4210_v36, %v3568_v37  ;;  %v4142_v46 = vld [vmem:[#allocation5 + $0x484] sm:$0xf] }
  0x7c   :  { %1868 = vmatpush.bf16.msrb.mxu3 %v3731_v22  ;;  %v3296_v48 = vld [vmem:[#allocation5 + $0x490] sm:$0xf0]  ;;  %v4174_v49 = vld [vmem:[#allocation5 + $0x584] sm:$0xf]  ;;  %v3699_v50 = vor.u32 %v4242_v38, %v3696_v40 }
  0x7d   :  { %1827 = vmatpush.bf16.msrb.mxu0 %v3331_v28  ;;  %v3424_v51 = vld [vmem:[#allocation5 + $0x590] sm:$0xf0]  ;;  %v4206_v52 = vld [vmem:[#allocation5 + $0x684] sm:$0xf]  ;;  %v3299_v56 = vor.u32 %v4142_v46, %v3296_v48  ;;  %v2838_v48 = vld [vmem:[#allocation5 + $0xe8] sm:$0xf] }
  0x7e   :  { %1841 = vmatpush.bf16.msrb.mxu1 %v3459_v29  ;;  %v3552_v53 = vld [vmem:[#allocation5 + $0x690] sm:$0xf0]  ;;  %v4238_v54 = vld [vmem:[#allocation5 + $0x784] sm:$0xf]  ;;  %v3427_v57 = vor.u32 %v4174_v49, %v3424_v51  ;;  %v4029_v49 = vld [vmem:[#allocation5 + $0xf4] sm:$0xf0] }
  0x7f   :  { %1855 = vmatpush.bf16.msrb.mxu2 %v3587_v30  ;;  %v3680_v55 = vld [vmem:[#allocation5 + $0x790] sm:$0xf0]  ;;  %v3555_v59 = vor.u32 %v4206_v52, %v3552_v53  ;;  %v4138_v60 = vld [vmem:[#allocation5 + $0x464] sm:$0xf]  ;;  %v4061_v52 = vld [vmem:[#allocation5 + $0x1f4] sm:$0xf0] }
  0x80   :  { %1869 = vmatpush.bf16.msrb.mxu3 %v3715_v34  ;;  %v3280_v61 = vld [vmem:[#allocation5 + $0x470] sm:$0xf0]  ;;  %v4170_v62 = vld [vmem:[#allocation5 + $0x564] sm:$0xf]  ;;  %v3683_v63 = vor.u32 %v4238_v54, %v3680_v55  ;;  %v3094_v53 = vld [vmem:[#allocation5 + $0x2e8] sm:$0xf] }
  0x81   :  { %1828 = vmatpush.bf16.msrb.mxu0 %v3315_v41  ;;  %v3408_v0 = vld [vmem:[#allocation5 + $0x570] sm:$0xf0]  ;;  %v4202_v2 = vld [vmem:[#allocation5 + $0x664] sm:$0xf]  ;;  %v3283_v6 = vor.u32 %v4138_v60, %v3280_v61  ;;  %v4093_v54 = vld [vmem:[#allocation5 + $0x2f4] sm:$0xf0]  ;;  %v2839_v61 = vor.u32 %v4029_v49, %v2838_v48 }
  0x82   :  { %1842 = vmatpush.bf16.msrb.mxu1 %v3443_v42  ;;  %v3536_v3 = vld [vmem:[#allocation5 + $0x670] sm:$0xf0]  ;;  %v4234_v4 = vld [vmem:[#allocation5 + $0x764] sm:$0xf]  ;;  %v3411_v7 = vor.u32 %v4170_v62, %v3408_v0  ;;  %v2822_v0 = vld [vmem:[#allocation5 + $0xc8] sm:$0xf] }
  0x83   :  { %1856 = vmatpush.bf16.msrb.mxu2 %v3571_v45  ;;  %v3664_v5 = vld [vmem:[#allocation5 + $0x770] sm:$0xf0]  ;;  %v3539_v8 = vor.u32 %v4202_v2, %v3536_v3  ;;  %v4134_v9 = vld [vmem:[#allocation5 + $0x444] sm:$0xf]  ;;  %v4025_v2 = vld [vmem:[#allocation5 + $0xd4] sm:$0xf0] }
  0x84   :  { %1870 = vmatpush.bf16.msrb.mxu3 %v3699_v50  ;;  %v3264_v11 = vld [vmem:[#allocation5 + $0x450] sm:$0xf0]  ;;  %v4166_v12 = vld [vmem:[#allocation5 + $0x544] sm:$0xf]  ;;  %v3667_v13 = vor.u32 %v4234_v4, %v3664_v5  ;;  %v2966_v50 = vld [vmem:[#allocation5 + $0x1e8] sm:$0xf] }
  0x85   :  { %1829 = vmatpush.bf16.msrb.mxu0 %v3299_v56  ;;  %v3392_v14 = vld [vmem:[#allocation5 + $0x550] sm:$0xf0]  ;;  %v4198_v15 = vld [vmem:[#allocation5 + $0x644] sm:$0xf]  ;;  %v3267_v20 = vor.u32 %v4134_v9, %v3264_v11  ;;  %v2967_v62 = vor.u32 %v4061_v52, %v2966_v50  ;;  %v2950_v3 = vld [vmem:[#allocation5 + $0x1c8] sm:$0xf]  ;;  %v2823_v11 = vor.u32 %v4025_v2, %v2822_v0 }
  0x86   :  { %1843 = vmatpush.bf16.msrb.mxu1 %v3427_v57  ;;  %v3520_v16 = vld [vmem:[#allocation5 + $0x650] sm:$0xf0]  ;;  %v4230_v18 = vld [vmem:[#allocation5 + $0x744] sm:$0xf]  ;;  %v3395_v21 = vor.u32 %v4166_v12, %v3392_v14  ;;  %v3222_v57 = vld [vmem:[#allocation5 + $0x3e8] sm:$0xf] }
  0x87   :  { %1857 = vmatpush.bf16.msrb.mxu2 %v3555_v59  ;;  %v3648_v19 = vld [vmem:[#allocation5 + $0x750] sm:$0xf0]  ;;  %v3523_v22 = vor.u32 %v4198_v15, %v3520_v16  ;;  %v4130_v23 = vld [vmem:[#allocation5 + $0x424] sm:$0xf]  ;;  %v4125_v59 = vld [vmem:[#allocation5 + $0x3f4] sm:$0xf0] }
  0x88   :  { %1871 = vmatpush.bf16.msrb.mxu3 %v3683_v63  ;;  %v3248_v24 = vld [vmem:[#allocation5 + $0x430] sm:$0xf0]  ;;  %v4162_v25 = vld [vmem:[#allocation5 + $0x524] sm:$0xf]  ;;  %v3651_v26 = vor.u32 %v4230_v18, %v3648_v19  ;;  %v3095_v63 = vor.u32 %v4093_v54, %v3094_v53  ;;  %v3223_v4 = vor.u32 %v4125_v59, %v3222_v57  ;;  %v4057_v5 = vld [vmem:[#allocation5 + $0x1d4] sm:$0xf0] }
  0x89   :  { %1830 = vmatpush.bf16.msrb.mxu0 %v3283_v6  ;;  %v3376_v27 = vld [vmem:[#allocation5 + $0x530] sm:$0xf0]  ;;  %v4194_v28 = vld [vmem:[#allocation5 + $0x624] sm:$0xf]  ;;  %v3251_v32 = vor.u32 %v4130_v23, %v3248_v24  ;;  %v3078_v6 = vld [vmem:[#allocation5 + $0x2c8] sm:$0xf]  ;;  %v2951_v12 = vor.u32 %v4057_v5, %v2950_v3 }
  0x8a   :  { %1844 = vmatpush.bf16.msrb.mxu1 %v3411_v7  ;;  %v3504_v29 = vld [vmem:[#allocation5 + $0x630] sm:$0xf0]  ;;  %v4226_v30 = vld [vmem:[#allocation5 + $0x724] sm:$0xf]  ;;  %v3379_v35 = vor.u32 %v4162_v25, %v3376_v27  ;;  %v4089_v7 = vld [vmem:[#allocation5 + $0x2d4] sm:$0xf0] }
  0x8b   :  { %1858 = vmatpush.bf16.msrb.mxu2 %v3539_v8  ;;  %v3632_v31 = vld [vmem:[#allocation5 + $0x730] sm:$0xf0]  ;;  %v4126_v33 = vld [vmem:[#allocation5 + $0x404] sm:$0xf]  ;;  %v3507_v36 = vor.u32 %v4194_v28, %v3504_v29  ;;  %v3206_v8 = vld [vmem:[#allocation5 + $0x3c8] sm:$0xf] }
  0x8c   :  { %1872 = vmatpush.bf16.msrb.mxu3 %v3667_v13  ;;  %v3232_v34 = vld [vmem:[#allocation5 + $0x410] sm:$0xf0]  ;;  %v4158_v37 = vld [vmem:[#allocation5 + $0x504] sm:$0xf]  ;;  %v3635_v41 = vor.u32 %v4226_v30, %v3632_v31  ;;  %v4121_v9 = vld [vmem:[#allocation5 + $0x3d4] sm:$0xf0]  ;;  %v3079_v13 = vor.u32 %v4089_v7, %v3078_v6 }
  0x8d   :  { %1831 = vmatpush.bf16.msrb.mxu0 %v3267_v20  ;;  %v3360_v38 = vld [vmem:[#allocation5 + $0x510] sm:$0xf0]  ;;  %v4190_v40 = vld [vmem:[#allocation5 + $0x604] sm:$0xf]  ;;  %v3235_v51 = vor.u32 %v4126_v33, %v3232_v34  ;;  %v2806_v14 = vld [vmem:[#allocation5 + $0xa8] sm:$0xf]  ;;  %v3207_v18 = vor.u32 %v4121_v9, %v3206_v8 }
  0x8e   :  { %1845 = vmatpush.bf16.msrb.mxu1 %v3395_v21  ;;  %v3488_v42 = vld [vmem:[#allocation5 + $0x610] sm:$0xf0]  ;;  %v4222_v45 = vld [vmem:[#allocation5 + $0x704] sm:$0xf]  ;;  %v3363_v55 = vor.u32 %v4158_v37, %v3360_v38  ;;  %v4021_v15 = vld [vmem:[#allocation5 + $0xb4] sm:$0xf0] }
  0x8f   :  { %1859 = vmatpush.bf16.msrb.mxu2 %v3523_v22  ;;  %v3616_v46 = vld [vmem:[#allocation5 + $0x710] sm:$0xf0]  ;;  %v3491_v56 = vor.u32 %v4190_v40, %v3488_v42  ;;  %v2934_v16 = vld [vmem:[#allocation5 + $0x1a8] sm:$0xf]  ;;  %v4053_v19 = vld [vmem:[#allocation5 + $0x1b4] sm:$0xf0]  ;;  %v2807_v24 = vor.u32 %v4021_v15, %v2806_v14 }
  0x90   :  { %1873 = vmatpush.bf16.msrb.mxu3 %v3651_v26  ;;  %v3619_v60 = vor.u32 %v4222_v45, %v3616_v46  ;;  %v3062_v20 = vld [vmem:[#allocation5 + $0x2a8] sm:$0xf]  ;;  %v4085_v21 = vld [vmem:[#allocation5 + $0x2b4] sm:$0xf0]  ;;  %v2935_v25 = vor.u32 %v4053_v19, %v2934_v16 }
  0x91   :  { %1832 = vmatpush.bf16.msrb.mxu0 %v3251_v32  ;;  %v3190_v22 = vld [vmem:[#allocation5 + $0x3a8] sm:$0xf]  ;;  %v4117_v23 = vld [vmem:[#allocation5 + $0x3b4] sm:$0xf0]  ;;  %v3063_v26 = vor.u32 %v4085_v21, %v3062_v20 }
  0x92   :  { %1846 = vmatpush.bf16.msrb.mxu1 %v3379_v35  ;;  %v2790_v27 = vld [vmem:[#allocation5 + $0x88] sm:$0xf]  ;;  %v4017_v28 = vld [vmem:[#allocation5 + $0x94] sm:$0xf0]  ;;  %v3191_v30 = vor.u32 %v4117_v23, %v3190_v22 }
  0x93   :  { %1860 = vmatpush.bf16.msrb.mxu2 %v3507_v36  ;;  %v2918_v29 = vld [vmem:[#allocation5 + $0x188] sm:$0xf]  ;;  %v4049_v31 = vld [vmem:[#allocation5 + $0x194] sm:$0xf0]  ;;  %v2791_v36 = vor.u32 %v4017_v28, %v2790_v27 }
  0x94   :  { %1874 = vmatpush.bf16.msrb.mxu3 %v3635_v41  ;;  %v3046_v32 = vld [vmem:[#allocation5 + $0x288] sm:$0xf]  ;;  %v4081_v33 = vld [vmem:[#allocation5 + $0x294] sm:$0xf0]  ;;  %v2919_v37 = vor.u32 %v4049_v31, %v2918_v29 }
  0x95   :  { %1833 = vmatpush.bf16.msrb.mxu0 %v3235_v51  ;;  %v3174_v34 = vld [vmem:[#allocation5 + $0x388] sm:$0xf]  ;;  %v4113_v35 = vld [vmem:[#allocation5 + $0x394] sm:$0xf0]  ;;  %v3047_v38 = vor.u32 %v4081_v33, %v3046_v32 }
  0x96   :  { %1847 = vmatpush.bf16.msrb.mxu1 %v3363_v55  ;;  %v2774_v40 = vld [vmem:[#allocation5 + $0x68] sm:$0xf]  ;;  %v4013_v41 = vld [vmem:[#allocation5 + $0x74] sm:$0xf0]  ;;  %v3175_v45 = vor.u32 %v4113_v35, %v3174_v34 }
  0x97   :  { %1861 = vmatpush.bf16.msrb.mxu2 %v3491_v56  ;;  %v2902_v42 = vld [vmem:[#allocation5 + $0x168] sm:$0xf]  ;;  %v4045_v46 = vld [vmem:[#allocation5 + $0x174] sm:$0xf0]  ;;  %v2775_v52 = vor.u32 %v4013_v41, %v2774_v40 }
  0x98   :  { %1875 = vmatpush.bf16.msrb.mxu3 %v3619_v60  ;;  %1834 = vmatmul.bf16.vlgmr.msrb.gmra.mxu0 %v4512_v39  ;;  %v3030_v48 = vld [vmem:[#allocation5 + $0x268] sm:$0xf]  ;;  %v4077_v49 = vld [vmem:[#allocation5 + $0x274] sm:$0xf0]  ;;  %v2903_v53 = vor.u32 %v4045_v46, %v2902_v42 }
  0x99   :  { %1882 = vmatpush.bf16.msra.mxu0 %v2839_v61  ;;  %1848 = vmatmul.bf16.vlgmr.msrb.gmra.mxu1 %v4516_v44  ;;  %v3158_v50 = vld [vmem:[#allocation5 + $0x368] sm:$0xf]  ;;  %v4109_v51 = vld [vmem:[#allocation5 + $0x374] sm:$0xf0]  ;;  %v3031_v54 = vor.u32 %v4077_v49, %v3030_v48 }
  0x9a   :  { %1896 = vmatpush.bf16.msra.mxu1 %v2967_v62  ;;  %1862 = vmatmul.bf16.vlgmr.msrb.gmra.mxu2 %v4514_v43  ;;  %v2758_v55 = vld [vmem:[#allocation5 + $0x48] sm:$0xf]  ;;  %v4009_v56 = vld [vmem:[#allocation5 + $0x54] sm:$0xf0]  ;;  %v3159_v59 = vor.u32 %v4109_v51, %v3158_v50 }
  0x9b   :  { %1910 = vmatpush.bf16.msra.mxu2 %v3095_v63  ;;  %1876 = vmatmul.bf16.vlgmr.msrb.gmra.mxu3 %v4518_v47  ;;  %v2886_v57 = vld [vmem:[#allocation5 + $0x148] sm:$0xf]  ;;  %v4041_v60 = vld [vmem:[#allocation5 + $0x154] sm:$0xf0]  ;;  %v2759_v2 = vor.u32 %v4009_v56, %v2758_v55 }
  0x9c   :  { %1924 = vmatpush.bf16.msra.mxu3 %v3223_v4  ;;  %v3014_v61 = vld [vmem:[#allocation5 + $0x248] sm:$0xf]  ;;  %v4073_v62 = vld [vmem:[#allocation5 + $0x254] sm:$0xf0]  ;;  %v2887_v3 = vor.u32 %v4041_v60, %v2886_v57 }
  0x9d   :  { %1883 = vmatpush.bf16.msra.mxu0 %v2823_v11  ;;  %v3142_v63 = vld [vmem:[#allocation5 + $0x348] sm:$0xf]  ;;  %v4105_v0 = vld [vmem:[#allocation5 + $0x354] sm:$0xf0]  ;;  %v3015_v4 = vor.u32 %v4073_v62, %v3014_v61 }
  0x9e   :  { %1897 = vmatpush.bf16.msra.mxu1 %v2951_v12  ;;  %v2742_v5 = vld [vmem:[#allocation5 + $0x28] sm:$0xf]  ;;  %v4005_v6 = vld [vmem:[#allocation5 + $0x34] sm:$0xf0]  ;;  %v3143_v8 = vor.u32 %v4105_v0, %v3142_v63 }
  0x9f   :  { %1911 = vmatpush.bf16.msra.mxu2 %v3079_v13  ;;  %v2870_v7 = vld [vmem:[#allocation5 + $0x128] sm:$0xf]  ;;  %v4037_v9 = vld [vmem:[#allocation5 + $0x134] sm:$0xf0]  ;;  %v2743_v15 = vor.u32 %v4005_v6, %v2742_v5 }
  0xa0   :  { %1925 = vmatpush.bf16.msra.mxu3 %v3207_v18  ;;  %v2998_v11 = vld [vmem:[#allocation5 + $0x228] sm:$0xf]  ;;  %v4069_v12 = vld [vmem:[#allocation5 + $0x234] sm:$0xf0]  ;;  %v2871_v19 = vor.u32 %v4037_v9, %v2870_v7 }
  0xa1   :  { %1884 = vmatpush.bf16.msra.mxu0 %v2807_v24  ;;  %v3126_v13 = vld [vmem:[#allocation5 + $0x328] sm:$0xf]  ;;  %v4101_v14 = vld [vmem:[#allocation5 + $0x334] sm:$0xf0]  ;;  %v2999_v20 = vor.u32 %v4069_v12, %v2998_v11 }
  0xa2   :  { %1898 = vmatpush.bf16.msra.mxu1 %v2935_v25  ;;  %v2726_v16 = vld [vmem:[#allocation5 + $0x8] sm:$0xf]  ;;  %v4001_v18 = vld [vmem:[#allocation5 + $0x14] sm:$0xf0]  ;;  %v3127_v24 = vor.u32 %v4101_v14, %v3126_v13 }
  0xa3   :  { %1912 = vmatpush.bf16.msra.mxu2 %v3063_v26  ;;  %v2854_v21 = vld [vmem:[#allocation5 + $0x108] sm:$0xf]  ;;  %v4033_v22 = vld [vmem:[#allocation5 + $0x114] sm:$0xf0]  ;;  %v2727_v31 = vor.u32 %v4001_v18, %v2726_v16 }
  0xa4   :  { %1926 = vmatpush.bf16.msra.mxu3 %v3191_v30  ;;  %v2982_v23 = vld [vmem:[#allocation5 + $0x208] sm:$0xf]  ;;  %v4065_v25 = vld [vmem:[#allocation5 + $0x214] sm:$0xf0]  ;;  %v2855_v35 = vor.u32 %v4033_v22, %v2854_v21 }
  0xa5   :  { %1885 = vmatpush.bf16.msra.mxu0 %v2791_v36  ;;  %v3110_v26 = vld [vmem:[#allocation5 + $0x308] sm:$0xf]  ;;  %v4097_v27 = vld [vmem:[#allocation5 + $0x314] sm:$0xf0]  ;;  %v2983_v36 = vor.u32 %v4065_v25, %v2982_v23 }
  0xa6   :  { %1899 = vmatpush.bf16.msra.mxu1 %v2919_v37  ;;  %v3350_v28 = vld [vmem:[#allocation5 + $0x4e8] sm:$0xf]  ;;  %v4157_v29 = vld [vmem:[#allocation5 + $0x4f4] sm:$0xf0]  ;;  %v3111_v40 = vor.u32 %v4097_v27, %v3110_v26 }
  0xa7   :  { %1913 = vmatpush.bf16.msra.mxu2 %v3047_v38  ;;  %v3478_v30 = vld [vmem:[#allocation5 + $0x5e8] sm:$0xf]  ;;  %v4189_v32 = vld [vmem:[#allocation5 + $0x5f4] sm:$0xf0]  ;;  %v3351_v41 = vor.u32 %v4157_v29, %v3350_v28 }
  0xa8   :  { %1927 = vmatpush.bf16.msra.mxu3 %v3175_v45  ;;  %v3606_v33 = vld [vmem:[#allocation5 + $0x6e8] sm:$0xf]  ;;  %v4221_v34 = vld [vmem:[#allocation5 + $0x6f4] sm:$0xf0]  ;;  %v3479_v42 = vor.u32 %v4189_v32, %v3478_v30 }
  0xa9   :  { %1886 = vmatpush.bf16.msra.mxu0 %v2775_v52  ;;  %v3734_v37 = vld [vmem:[#allocation5 + $0x7e8] sm:$0xf]  ;;  %v4253_v38 = vld [vmem:[#allocation5 + $0x7f4] sm:$0xf0]  ;;  %v3607_v45 = vor.u32 %v4221_v34, %v3606_v33 }
  0xaa   :  { %1900 = vmatpush.bf16.msra.mxu1 %v2903_v53  ;;  %v3334_v46 = vld [vmem:[#allocation5 + $0x4c8] sm:$0xf]  ;;  %v4153_v48 = vld [vmem:[#allocation5 + $0x4d4] sm:$0xf0]  ;;  %v3735_v50 = vor.u32 %v4253_v38, %v3734_v37 }
  0xab   :  { %1914 = vmatpush.bf16.msra.mxu2 %v3031_v54  ;;  %v3462_v49 = vld [vmem:[#allocation5 + $0x5c8] sm:$0xf]  ;;  %v4185_v51 = vld [vmem:[#allocation5 + $0x5d4] sm:$0xf0]  ;;  %v3335_v56 = vor.u32 %v4153_v48, %v3334_v46 }
  0xac   :  { %1928 = vmatpush.bf16.msra.mxu3 %v3159_v59  ;;  %v3590_v52 = vld [vmem:[#allocation5 + $0x6c8] sm:$0xf]  ;;  %v4217_v53 = vld [vmem:[#allocation5 + $0x6d4] sm:$0xf0]  ;;  %v3463_v57 = vor.u32 %v4185_v51, %v3462_v49 }
  0xad   :  { %1887 = vmatpush.bf16.msra.mxu0 %v2759_v2  ;;  %v3718_v54 = vld [vmem:[#allocation5 + $0x7c8] sm:$0xf]  ;;  %v4249_v55 = vld [vmem:[#allocation5 + $0x7d4] sm:$0xf0]  ;;  %v3591_v59 = vor.u32 %v4217_v53, %v3590_v52 }
  0xae   :  { %1901 = vmatpush.bf16.msra.mxu1 %v2887_v3  ;;  %v3318_v60 = vld [vmem:[#allocation5 + $0x4a8] sm:$0xf]  ;;  %v4149_v61 = vld [vmem:[#allocation5 + $0x4b4] sm:$0xf0]  ;;  %v3719_v63 = vor.u32 %v4249_v55, %v3718_v54 }
  0xaf   :  { %1915 = vmatpush.bf16.msra.mxu2 %v3015_v4  ;;  %v3446_v62 = vld [vmem:[#allocation5 + $0x5a8] sm:$0xf]  ;;  %v4181_v0 = vld [vmem:[#allocation5 + $0x5b4] sm:$0xf0]  ;;  %v3319_v6 = vor.u32 %v4149_v61, %v3318_v60 }
  0xb0   :  { %1929 = vmatpush.bf16.msra.mxu3 %v3143_v8  ;;  %v3574_v2 = vld [vmem:[#allocation5 + $0x6a8] sm:$0xf]  ;;  %v4213_v3 = vld [vmem:[#allocation5 + $0x6b4] sm:$0xf0]  ;;  %v3447_v7 = vor.u32 %v4181_v0, %v3446_v62 }
  0xb1   :  { %1888 = vmatpush.bf16.msra.mxu0 %v2743_v15  ;;  %v3702_v4 = vld [vmem:[#allocation5 + $0x7a8] sm:$0xf]  ;;  %v4245_v5 = vld [vmem:[#allocation5 + $0x7b4] sm:$0xf0]  ;;  %v3575_v8 = vor.u32 %v4213_v3, %v3574_v2 }
  0xb2   :  { %1902 = vmatpush.bf16.msra.mxu1 %v2871_v19  ;;  %v3302_v9 = vld [vmem:[#allocation5 + $0x488] sm:$0xf]  ;;  %v4145_v11 = vld [vmem:[#allocation5 + $0x494] sm:$0xf0]  ;;  %v3703_v13 = vor.u32 %v4245_v5, %v3702_v4 }
  0xb3   :  { %1916 = vmatpush.bf16.msra.mxu2 %v2999_v20  ;;  %v3430_v12 = vld [vmem:[#allocation5 + $0x588] sm:$0xf]  ;;  %v4177_v14 = vld [vmem:[#allocation5 + $0x594] sm:$0xf0]  ;;  %v3303_v20 = vor.u32 %v4145_v11, %v3302_v9  ;;  %v4027_v11 = vld [vmem:[#allocation5 + $0xec] sm:$0xf] }
  0xb4   :  { %1930 = vmatpush.bf16.msra.mxu3 %v3127_v24  ;;  %v3558_v15 = vld [vmem:[#allocation5 + $0x688] sm:$0xf]  ;;  %v4209_v16 = vld [vmem:[#allocation5 + $0x694] sm:$0xf0]  ;;  %v3431_v21 = vor.u32 %v4177_v14, %v3430_v12  ;;  %v2840_v12 = vld [vmem:[#allocation5 + $0xf8] sm:$0xf0] }
  0xb5   :  { %1889 = vmatpush.bf16.msra.mxu0 %v2727_v31  ;;  %v3686_v18 = vld [vmem:[#allocation5 + $0x788] sm:$0xf]  ;;  %v4241_v19 = vld [vmem:[#allocation5 + $0x794] sm:$0xf0]  ;;  %v3559_v22 = vor.u32 %v4209_v16, %v3558_v15  ;;  %v2968_v15 = vld [vmem:[#allocation5 + $0x1f8] sm:$0xf0] }
  0xb6   :  { %1903 = vmatpush.bf16.msra.mxu1 %v2855_v35  ;;  %v3286_v23 = vld [vmem:[#allocation5 + $0x468] sm:$0xf]  ;;  %v4141_v24 = vld [vmem:[#allocation5 + $0x474] sm:$0xf0]  ;;  %v3687_v26 = vor.u32 %v4241_v19, %v3686_v18  ;;  %v4091_v16 = vld [vmem:[#allocation5 + $0x2ec] sm:$0xf] }
  0xb7   :  { %1917 = vmatpush.bf16.msra.mxu2 %v2983_v36  ;;  %v3414_v25 = vld [vmem:[#allocation5 + $0x568] sm:$0xf]  ;;  %v4173_v27 = vld [vmem:[#allocation5 + $0x574] sm:$0xf0]  ;;  %v3287_v32 = vor.u32 %v4141_v24, %v3286_v23  ;;  %v3096_v18 = vld [vmem:[#allocation5 + $0x2f8] sm:$0xf0]  ;;  %v2843_v24 = vor.u32 %v4027_v11, %v2840_v12 }
  0xb8   :  { %1931 = vmatpush.bf16.msra.mxu3 %v3111_v40  ;;  %1890 = vmatmul.bf16.vlgmr.msra.gmra.mxu0 %v4500_v58  ;;  %v3542_v28 = vld [vmem:[#allocation5 + $0x668] sm:$0xf]  ;;  %v4205_v29 = vld [vmem:[#allocation5 + $0x674] sm:$0xf0]  ;;  %v3415_v33 = vor.u32 %v4173_v27, %v3414_v25  ;;  %v4023_v27 = vld [vmem:[#allocation5 + $0xcc] sm:$0xf] }
  0xb9   :  { %1938 = vmatpush.bf16.msrb.mxu0 %v3351_v41  ;;  %1904 = vmatmul.bf16.vlgmr.msra.gmra.mxu1 %v4506_v10  ;;  %v3670_v30 = vld [vmem:[#allocation5 + $0x768] sm:$0xf]  ;;  %v4237_v31 = vld [vmem:[#allocation5 + $0x774] sm:$0xf0]  ;;  %v3543_v34 = vor.u32 %v4205_v29, %v3542_v28  ;;  %v2824_v28 = vld [vmem:[#allocation5 + $0xd8] sm:$0xf0] }
  0xba   :  { %1952 = vmatpush.bf16.msrb.mxu1 %v3479_v42  ;;  %1918 = vmatmul.bf16.vlgmr.msra.gmra.mxu2 %v4502_v1  ;;  %v3270_v35 = vld [vmem:[#allocation5 + $0x448] sm:$0xf]  ;;  %v4137_v36 = vld [vmem:[#allocation5 + $0x454] sm:$0xf0]  ;;  %v3671_v38 = vor.u32 %v4237_v31, %v3670_v30  ;;  %v4055_v29 = vld [vmem:[#allocation5 + $0x1cc] sm:$0xf] }
  0xbb   :  { %1966 = vmatpush.bf16.msrb.mxu2 %v3607_v45  ;;  %1932 = vmatmul.bf16.vlgmr.msra.gmra.mxu3 %v4508_v17  ;;  %v3398_v37 = vld [vmem:[#allocation5 + $0x548] sm:$0xf]  ;;  %v4169_v40 = vld [vmem:[#allocation5 + $0x554] sm:$0xf0]  ;;  %v3271_v48 = vor.u32 %v4137_v36, %v3270_v35  ;;  %v2952_v31 = vld [vmem:[#allocation5 + $0x1d8] sm:$0xf0]  ;;  %v2827_v36 = vor.u32 %v4023_v27, %v2824_v28 }
  0xbc   :  { %1980 = vmatpush.bf16.msrb.mxu3 %v3735_v50  ;;  %v3526_v41 = vld [vmem:[#allocation5 + $0x648] sm:$0xf]  ;;  %v4201_v42 = vld [vmem:[#allocation5 + $0x654] sm:$0xf0]  ;;  %v3399_v49 = vor.u32 %v4169_v40, %v3398_v37  ;;  %v3208_v35 = vld [vmem:[#allocation5 + $0x3d8] sm:$0xf0]  ;;  %v2955_v37 = vor.u32 %v4055_v29, %v2952_v31 }
  0xbd   :  { %1939 = vmatpush.bf16.msrb.mxu0 %v3335_v56  ;;  %v3654_v45 = vld [vmem:[#allocation5 + $0x748] sm:$0xf]  ;;  %v4233_v46 = vld [vmem:[#allocation5 + $0x754] sm:$0xf0]  ;;  %v3527_v50 = vor.u32 %v4201_v42, %v3526_v41  ;;  %v4019_v40 = vld [vmem:[#allocation5 + $0xac] sm:$0xf] }
  0xbe   :  { %1953 = vmatpush.bf16.msrb.mxu1 %v3463_v57  ;;  %v3254_v51 = vld [vmem:[#allocation5 + $0x428] sm:$0xf]  ;;  %v4133_v52 = vld [vmem:[#allocation5 + $0x434] sm:$0xf0]  ;;  %v3655_v54 = vor.u32 %v4233_v46, %v3654_v45  ;;  %v2808_v41 = vld [vmem:[#allocation5 + $0xb8] sm:$0xf0] }
  0xbf   :  { %1967 = vmatpush.bf16.msrb.mxu2 %v3591_v59  ;;  %v3382_v53 = vld [vmem:[#allocation5 + $0x528] sm:$0xf]  ;;  %v4165_v55 = vld [vmem:[#allocation5 + $0x534] sm:$0xf0]  ;;  %v3255_v61 = vor.u32 %v4133_v52, %v3254_v51  ;;  %v4051_v42 = vld [vmem:[#allocation5 + $0x1ac] sm:$0xf]  ;;  %v2811_v52 = vor.u32 %v4019_v40, %v2808_v41 }
  0xc0   :  { %1981 = vmatpush.bf16.msrb.mxu3 %v3719_v63  ;;  %v3510_v56 = vld [vmem:[#allocation5 + $0x628] sm:$0xf]  ;;  %v4197_v57 = vld [vmem:[#allocation5 + $0x634] sm:$0xf0]  ;;  %v3383_v0 = vor.u32 %v4165_v55, %v3382_v53  ;;  %v2936_v46 = vld [vmem:[#allocation5 + $0x1b8] sm:$0xf0] }
  0xc1   :  { %1940 = vmatpush.bf16.msrb.mxu0 %v3319_v6  ;;  %v3638_v59 = vld [vmem:[#allocation5 + $0x728] sm:$0xf]  ;;  %v4229_v60 = vld [vmem:[#allocation5 + $0x734] sm:$0xf0]  ;;  %v3511_v2 = vor.u32 %v4197_v57, %v3510_v56  ;;  %v3192_v51 = vld [vmem:[#allocation5 + $0x3b8] sm:$0xf0]  ;;  %v2939_v53 = vor.u32 %v4051_v42, %v2936_v46 }
  0xc2   :  { %1954 = vmatpush.bf16.msrb.mxu1 %v3447_v7  ;;  %v3238_v62 = vld [vmem:[#allocation5 + $0x408] sm:$0xf]  ;;  %v4129_v63 = vld [vmem:[#allocation5 + $0x414] sm:$0xf0]  ;;  %v3639_v6 = vor.u32 %v4229_v60, %v3638_v59  ;;  %v4015_v55 = vld [vmem:[#allocation5 + $0x8c] sm:$0xf] }
  0xc3   :  { %1968 = vmatpush.bf16.msrb.mxu2 %v3575_v8  ;;  %v3366_v3 = vld [vmem:[#allocation5 + $0x508] sm:$0xf]  ;;  %v4161_v4 = vld [vmem:[#allocation5 + $0x514] sm:$0xf0]  ;;  %v3239_v14 = vor.u32 %v4129_v63, %v3238_v62  ;;  %v2792_v56 = vld [vmem:[#allocation5 + $0x98] sm:$0xf0] }
  0xc4   :  { %1982 = vmatpush.bf16.msrb.mxu3 %v3703_v13  ;;  %v3494_v5 = vld [vmem:[#allocation5 + $0x608] sm:$0xf]  ;;  %v4193_v7 = vld [vmem:[#allocation5 + $0x614] sm:$0xf0]  ;;  %v4059_v13 = vld [vmem:[#allocation5 + $0x1ec] sm:$0xf]  ;;  %v3367_v19 = vor.u32 %v4161_v4, %v3366_v3  ;;  %v4540_v3 = vpop.f32.mrf.mxu0 }
  0xc5   :  { %1941 = vmatpush.bf16.msrb.mxu0 %v3303_v20  ;;  %v3622_v8 = vld [vmem:[#allocation5 + $0x708] sm:$0xf]  ;;  %v4225_v9 = vld [vmem:[#allocation5 + $0x714] sm:$0xf0]  ;;  %v3495_v20 = vor.u32 %v4193_v7, %v3494_v5  ;;  %v2971_v25 = vor.u32 %v4059_v13, %v2968_v15  ;;  %v4047_v57 = vld [vmem:[#allocation5 + $0x18c] sm:$0xf] }
  0xc6   :  { %1955 = vmatpush.bf16.msrb.mxu1 %v3431_v21  ;;  %v4123_v21 = vld [vmem:[#allocation5 + $0x3ec] sm:$0xf]  ;;  %v3623_v23 = vor.u32 %v4225_v9, %v3622_v8  ;;  %v2920_v60 = vld [vmem:[#allocation5 + $0x198] sm:$0xf0]  ;;  %v4542_v9 = vpop.f32.mrf.mxu1 }
  0xc7   :  { %1969 = vmatpush.bf16.msrb.mxu2 %v3559_v22  ;;  %v3224_v22 = vld [vmem:[#allocation5 + $0x3f8] sm:$0xf0]  ;;  %v4111_v63 = vld [vmem:[#allocation5 + $0x38c] sm:$0xf]  ;;  %v2923_v4 = vor.u32 %v4047_v57, %v2920_v60 }
  0xc8   :  { %1983 = vmatpush.bf16.msrb.mxu3 %v3687_v26  ;;  %v3099_v26 = vor.u32 %v4091_v16, %v3096_v18  ;;  %v3227_v30 = vor.u32 %v4123_v21, %v3224_v22  ;;  %v3048_v62 = vld [vmem:[#allocation5 + $0x298] sm:$0xf0]  ;;  %v4043_v8 = vld [vmem:[#allocation5 + $0x16c] sm:$0xf] }
  0xc9   :  { %1942 = vmatpush.bf16.msrb.mxu0 %v3287_v32  ;;  %v4087_v32 = vld [vmem:[#allocation5 + $0x2cc] sm:$0xf]  ;;  %v2776_v7 = vld [vmem:[#allocation5 + $0x78] sm:$0xf0] }
  0xca   :  { %1956 = vmatpush.bf16.msrb.mxu1 %v3415_v33  ;;  %v3080_v33 = vld [vmem:[#allocation5 + $0x2d8] sm:$0xf0]  ;;  %v4075_v13 = vld [vmem:[#allocation5 + $0x26c] sm:$0xf] }
  0xcb   :  { %1970 = vmatpush.bf16.msrb.mxu2 %v3543_v34  ;;  %v4119_v34 = vld [vmem:[#allocation5 + $0x3cc] sm:$0xf]  ;;  %v2904_v12 = vld [vmem:[#allocation5 + $0x178] sm:$0xf0] }
  0xcc   :  { %1984 = vmatpush.bf16.msrb.mxu3 %v3671_v38  ;;  %v3083_v38 = vor.u32 %v4087_v32, %v3080_v33  ;;  %v3211_v45 = vor.u32 %v4119_v34, %v3208_v35  ;;  %v4107_v15 = vld [vmem:[#allocation5 + $0x36c] sm:$0xf]  ;;  %v3160_v16 = vld [vmem:[#allocation5 + $0x378] sm:$0xf0]  ;;  %v4546_v32 = vpop.f32.mrf.mxu3 }
  0xcd   :  { %1943 = vmatpush.bf16.msrb.mxu0 %v3271_v48  ;;  %v4083_v48 = vld [vmem:[#allocation5 + $0x2ac] sm:$0xf]  ;;  %v2760_v22 = vld [vmem:[#allocation5 + $0x58] sm:$0xf0] }
  0xce   :  { %1957 = vmatpush.bf16.msrb.mxu1 %v3399_v49  ;;  %v3064_v49 = vld [vmem:[#allocation5 + $0x2b8] sm:$0xf0]  ;;  %v4007_v21 = vld [vmem:[#allocation5 + $0x4c] sm:$0xf] }
  0xcf   :  { %1971 = vmatpush.bf16.msrb.mxu2 %v3527_v50  ;;  %v4115_v50 = vld [vmem:[#allocation5 + $0x3ac] sm:$0xf]  ;;  %v3016_v27 = vld [vmem:[#allocation5 + $0x258] sm:$0xf0]  ;;  %v2763_v31 = vor.u32 %v4007_v21, %v2760_v22 }
  0xd0   :  { %1985 = vmatpush.bf16.msrb.mxu3 %v3655_v54  ;;  %v3067_v54 = vor.u32 %v4083_v48, %v3064_v49  ;;  %v3195_v59 = vor.u32 %v4115_v50, %v3192_v51  ;;  %v4103_v28 = vld [vmem:[#allocation5 + $0x34c] sm:$0xf]  ;;  %v3144_v29 = vld [vmem:[#allocation5 + $0x358] sm:$0xf0]  ;;  %v4550_v49 = vpop.f32.mrf.mxu1 }
  0xd1   :  { %1944 = vmatpush.bf16.msrb.mxu0 %v3255_v61  ;;  %v4079_v61 = vld [vmem:[#allocation5 + $0x28c] sm:$0xf]  ;;  %v2872_v40 = vld [vmem:[#allocation5 + $0x138] sm:$0xf0] }
  0xd2   :  { %1958 = vmatpush.bf16.msrb.mxu1 %v3383_v0  ;;  %v3176_v0 = vld [vmem:[#allocation5 + $0x398] sm:$0xf0]  ;;  %v3051_v5 = vor.u32 %v4079_v61, %v3048_v62  ;;  %v4003_v35 = vld [vmem:[#allocation5 + $0x2c] sm:$0xf] }
  0xd3   :  { %1972 = vmatpush.bf16.msrb.mxu2 %v3511_v2  ;;  %v2795_v2 = vor.u32 %v4015_v55, %v2792_v56  ;;  %v3179_v11 = vor.u32 %v4111_v63, %v3176_v0  ;;  %v4067_v41 = vld [vmem:[#allocation5 + $0x22c] sm:$0xf]  ;;  %v3000_v42 = vld [vmem:[#allocation5 + $0x238] sm:$0xf0] }
  0xd4   :  { %1986 = vmatpush.bf16.msrb.mxu3 %v3639_v6  ;;  %v4011_v6 = vld [vmem:[#allocation5 + $0x6c] sm:$0xf]  ;;  %v3128_v48 = vld [vmem:[#allocation5 + $0x338] sm:$0xf0] }
  0xd5   :  { %1945 = vmatpush.bf16.msrb.mxu0 %v3239_v14  ;;  %v3032_v14 = vld [vmem:[#allocation5 + $0x278] sm:$0xf0]  ;;  %v2779_v18 = vor.u32 %v4011_v6, %v2776_v7  ;;  %v4099_v46 = vld [vmem:[#allocation5 + $0x32c] sm:$0xf] }
  0xd6   :  { %1959 = vmatpush.bf16.msrb.mxu1 %v3367_v19  ;;  %v2907_v19 = vor.u32 %v4043_v8, %v2904_v12  ;;  %v3999_v51 = vld [vmem:[#allocation5 + $0xc] sm:$0xf]  ;;  %v2856_v56 = vld [vmem:[#allocation5 + $0x118] sm:$0xf0] }
  0xd7   :  { %1973 = vmatpush.bf16.msrb.mxu2 %v3495_v20  ;;  %v3035_v20 = vor.u32 %v4075_v13, %v3032_v14  ;;  %v4031_v55 = vld [vmem:[#allocation5 + $0x10c] sm:$0xf]  ;;  %v2984_v60 = vld [vmem:[#allocation5 + $0x218] sm:$0xf0] }
  0xd8   :  { %1987 = vmatpush.bf16.msrb.mxu3 %v3623_v23  ;;  %1946 = vmatmul.bf16.vlgmr.msrb.gmra.mxu0 %v4512_v39  ;;  %v4039_v23 = vld [vmem:[#allocation5 + $0x14c] sm:$0xf]  ;;  %v3112_v62 = vld [vmem:[#allocation5 + $0x318] sm:$0xf0]  ;;  %v2859_v8 = vor.u32 %v4031_v55, %v2856_v56 }
  0xd9   :  { %1994 = vmatpush.bf16.msra.mxu0 %v2843_v24  ;;  %1960 = vmatmul.bf16.vlgmr.msrb.gmra.mxu1 %v4516_v44  ;;  %v3163_v24 = vor.u32 %v4107_v15, %v3160_v16  ;;  %v4063_v57 = vld [vmem:[#allocation5 + $0x20c] sm:$0xf]  ;;  %v3352_v0 = vld [vmem:[#allocation5 + $0x4f8] sm:$0xf0] }
  0xda   :  { %2008 = vmatpush.bf16.msra.mxu1 %v2971_v25  ;;  %1974 = vmatmul.bf16.vlgmr.msrb.gmra.mxu2 %v4514_v43  ;;  %v2888_v25 = vld [vmem:[#allocation5 + $0x158] sm:$0xf0]  ;;  %v4095_v61 = vld [vmem:[#allocation5 + $0x30c] sm:$0xf] }
  0xdb   :  { %2022 = vmatpush.bf16.msra.mxu2 %v3099_v26  ;;  %1988 = vmatmul.bf16.vlgmr.msrb.gmra.mxu3 %v4518_v47  ;;  %v4071_v26 = vld [vmem:[#allocation5 + $0x24c] sm:$0xf]  ;;  %v2891_v33 = vor.u32 %v4039_v23, %v2888_v25  ;;  %v3608_v7 = vld [vmem:[#allocation5 + $0x6f8] sm:$0xf0]  ;;  %v3115_v15 = vor.u32 %v4095_v61, %v3112_v62 }
  0xdc   :  { %2036 = vmatpush.bf16.msra.mxu3 %v3227_v30  ;;  %v4544_v30 = vpop.f32.mrf.mxu2  ;;  %v3019_v34 = vor.u32 %v4071_v26, %v3016_v27  ;;  %v4155_v63 = vld [vmem:[#allocation5 + $0x4ec] sm:$0xf]  ;;  %v3736_v13 = vld [vmem:[#allocation5 + $0x7f8] sm:$0xf0] }
  0xdd   :  { %1995 = vmatpush.bf16.msra.mxu0 %v2827_v36  ;;  %v2744_v36 = vld [vmem:[#allocation5 + $0x38] sm:$0xf0]  ;;  %v4219_v6 = vld [vmem:[#allocation5 + $0x6ec] sm:$0xf]  ;;  %v3355_v16 = vor.u32 %v4155_v63, %v3352_v0 }
  0xde   :  { %2009 = vmatpush.bf16.msra.mxu1 %v2955_v37  ;;  %v4035_v37 = vld [vmem:[#allocation5 + $0x12c] sm:$0xf]  ;;  %v2747_v50 = vor.u32 %v4003_v35, %v2744_v36  ;;  %v3336_v22 = vld [vmem:[#allocation5 + $0x4d8] sm:$0xf0] }
  0xdf   :  { %2023 = vmatpush.bf16.msra.mxu2 %v3083_v38  ;;  %v3147_v38 = vor.u32 %v4103_v28, %v3144_v29  ;;  %v4251_v12 = vld [vmem:[#allocation5 + $0x7ec] sm:$0xf]  ;;  %v3464_v25 = vld [vmem:[#allocation5 + $0x5d8] sm:$0xf0] }
  0xe0   :  { %2037 = vmatpush.bf16.msra.mxu3 %v3211_v45  ;;  %v4548_v45 = vpop.f32.mrf.mxu0  ;;  %v4151_v21 = vld [vmem:[#allocation5 + $0x4cc] sm:$0xf]  ;;  %v3592_v27 = vld [vmem:[#allocation5 + $0x6d8] sm:$0xf0] }
  0xe1   :  { %1996 = vmatpush.bf16.msra.mxu0 %v2811_v52  ;;  %v2728_v52 = vld [vmem:[#allocation5 + $0x18] sm:$0xf0]  ;;  %v4183_v23 = vld [vmem:[#allocation5 + $0x5cc] sm:$0xf] }
  0xe2   :  { %2010 = vmatpush.bf16.msra.mxu1 %v2939_v53  ;;  %v2875_v53 = vor.u32 %v4035_v37, %v2872_v40  ;;  %v4215_v26 = vld [vmem:[#allocation5 + $0x6cc] sm:$0xf]  ;;  %v3467_v35 = vor.u32 %v4183_v23, %v3464_v25  ;;  %v3304_v56 = vld [vmem:[#allocation5 + $0x498] sm:$0xf0] }
  0xe3   :  { %2024 = vmatpush.bf16.msra.mxu2 %v3067_v54  ;;  %v3003_v54 = vor.u32 %v4067_v41, %v3000_v42  ;;  %v4247_v29 = vld [vmem:[#allocation5 + $0x7cc] sm:$0xf]  ;;  %v3595_v36 = vor.u32 %v4215_v26, %v3592_v27  ;;  %v3448_v42 = vld [vmem:[#allocation5 + $0x5b8] sm:$0xf0] }
  0xe4   :  { %2038 = vmatpush.bf16.msra.mxu3 %v3195_v59  ;;  %v3131_v59 = vor.u32 %v4099_v46, %v3128_v48  ;;  %v4552_v14 = vpop.f32.mrf.mxu2  ;;  %v4147_v37 = vld [vmem:[#allocation5 + $0x4ac] sm:$0xf]  ;;  %v3576_v48 = vld [vmem:[#allocation5 + $0x6b8] sm:$0xf0] }
  0xe5   :  { %1997 = vmatpush.bf16.msra.mxu0 %v2795_v2  ;;  %v4187_v2 = vld [vmem:[#allocation5 + $0x5ec] sm:$0xf]  ;;  %v3688_v63 = vld [vmem:[#allocation5 + $0x798] sm:$0xf0] }
  0xe6   :  { %2011 = vmatpush.bf16.msra.mxu1 %v2923_v4  ;;  %v2731_v4 = vor.u32 %v3999_v51, %v2728_v52  ;;  %v4179_v40 = vld [vmem:[#allocation5 + $0x5ac] sm:$0xf]  ;;  %v3704_v51 = vld [vmem:[#allocation5 + $0x7b8] sm:$0xf0] }
  0xe7   :  { %2025 = vmatpush.bf16.msra.mxu2 %v3051_v5  ;;  %v3480_v5 = vld [vmem:[#allocation5 + $0x5f8] sm:$0xf0]  ;;  %v4211_v46 = vld [vmem:[#allocation5 + $0x6ac] sm:$0xf] }
  0xe8   :  { %2039 = vmatpush.bf16.msra.mxu3 %v3179_v11  ;;  %v2987_v11 = vor.u32 %v4063_v57, %v2984_v60  ;;  %v4556_v28 = vpop.f32.mrf.mxu0  ;;  %v4143_v55 = vld [vmem:[#allocation5 + $0x48c] sm:$0xf]  ;;  %v3432_v60 = vld [vmem:[#allocation5 + $0x598] sm:$0xf0] }
  0xe9   :  { %1998 = vmatpush.bf16.msra.mxu0 %v2779_v18  ;;  %v4554_v18 = vpop.f32.mrf.mxu3  ;;  %v4207_v61 = vld [vmem:[#allocation5 + $0x68c] sm:$0xf]  ;;  %v3272_v25 = vld [vmem:[#allocation5 + $0x458] sm:$0xf0] }
  0xea   :  { %2012 = vmatpush.bf16.msra.mxu1 %v2907_v19  ;;  %v3483_v19 = vor.u32 %v4187_v2, %v3480_v5  ;;  %v4139_v5 = vld [vmem:[#allocation5 + $0x46c] sm:$0xf] }
  0xeb   :  { %2026 = vmatpush.bf16.msra.mxu2 %v3035_v20  ;;  %v3611_v20 = vor.u32 %v4219_v6, %v3608_v7  ;;  %v3288_v6 = vld [vmem:[#allocation5 + $0x478] sm:$0xf0]  ;;  %v4171_v7 = vld [vmem:[#allocation5 + $0x56c] sm:$0xf] }
  0xec   :  { %2040 = vmatpush.bf16.msra.mxu3 %v3163_v24  ;;  %v3739_v24 = vor.u32 %v4251_v12, %v3736_v13  ;;  %v4564_v57 = vpop.f32.mrf.mxu2  ;;  %v3416_v12 = vld [vmem:[#allocation5 + $0x578] sm:$0xf0]  ;;  %v4203_v13 = vld [vmem:[#allocation5 + $0x66c] sm:$0xf] }
  0xed   :  { %1999 = vmatpush.bf16.msra.mxu0 %v2763_v31  ;;  %v3720_v31 = vld [vmem:[#allocation5 + $0x7d8] sm:$0xf0]  ;;  %v4167_v26 = vld [vmem:[#allocation5 + $0x54c] sm:$0xf] }
  0xee   :  { %2013 = vmatpush.bf16.msra.mxu1 %v2891_v33  ;;  %v4558_v33 = vpop.f32.mrf.mxu1  ;;  %v3723_v41 = vor.u32 %v4247_v29, %v3720_v31  ;;  %v3400_v29 = vld [vmem:[#allocation5 + $0x558] sm:$0xf0]  ;;  %v4199_v31 = vld [vmem:[#allocation5 + $0x64c] sm:$0xf] }
  0xef   :  { %2027 = vmatpush.bf16.msra.mxu2 %v3019_v34  ;;  %v3339_v34 = vor.u32 %v4151_v21, %v3336_v22  ;;  %v3291_v21 = vor.u32 %v4139_v5, %v3288_v6  ;;  %v3419_v22 = vor.u32 %v4171_v7, %v3416_v12  ;;  %v4159_v5 = vld [vmem:[#allocation5 + $0x50c] sm:$0xf]  ;;  %v3368_v6 = vld [vmem:[#allocation5 + $0x518] sm:$0xf0] }
  0xf0   :  { %2041 = vmatpush.bf16.msra.mxu3 %v3147_v38  ;;  %v3320_v38 = vld [vmem:[#allocation5 + $0x4b8] sm:$0xf0]  ;;  %v4568_v0 = vpop.f32.mrf.mxu0  ;;  %v4191_v12 = vld [vmem:[#allocation5 + $0x60c] sm:$0xf] }
  0xf1   :  { %2000 = vmatpush.bf16.msra.mxu0 %v2747_v50  ;;  %v4243_v50 = vld [vmem:[#allocation5 + $0x7ac] sm:$0xf]  ;;  %v3323_v52 = vor.u32 %v4147_v37, %v3320_v38  ;;  %v4566_v62 = vpop.f32.mrf.mxu3 }
  0xf2   :  { %2014 = vmatpush.bf16.msra.mxu1 %v2875_v53  ;;  %v3451_v53 = vor.u32 %v4179_v40, %v3448_v42  ;;  %v3403_v42 = vor.u32 %v4167_v26, %v3400_v29 }
  0xf3   :  { %2028 = vmatpush.bf16.msra.mxu2 %v3003_v54  ;;  %v3579_v54 = vor.u32 %v4211_v46, %v3576_v48 }
  0xf4   :  { %2042 = vmatpush.bf16.msra.mxu3 %v3131_v59  ;;  %v3707_v59 = vor.u32 %v4243_v50, %v3704_v51  ;;  %v4575_v38 = vpop.f32.mrf.mxu2  ;;  %v4131_v50 = vld [vmem:[#allocation5 + $0x42c] sm:$0xf]  ;;  %v3256_v51 = vld [vmem:[#allocation5 + $0x438] sm:$0xf0] }
  0xf5   :  { %2001 = vmatpush.bf16.msra.mxu0 %v2731_v4 }
  0xf6   :  { %2015 = vmatpush.bf16.msra.mxu1 %v2859_v8  ;;  %v4570_v8 = vpop.f32.mrf.mxu1 }
  0xf7   :  { %2029 = vmatpush.bf16.msra.mxu2 %v2987_v11 }
  0xf8   :  { %2043 = vmatpush.bf16.msra.mxu3 %v3115_v15  ;;  %2002 = vmatmul.bf16.vlgmr.msra.gmra.mxu0 %v4500_v58  ;;  %v3560_v58 = vld [vmem:[#allocation5 + $0x698] sm:$0xf0]  ;;  %v1779_v48 = vpop.f32.mrf.mxu0 }
  0xf9   :  { %2050 = vmatpush.bf16.msrb.mxu0 %v3355_v16  ;;  %2016 = vmatmul.bf16.vlgmr.msra.gmra.mxu1 %v4506_v10  ;;  %v3307_v10 = vor.u32 %v4143_v55, %v3304_v56  ;;  %v3563_v4 = vor.u32 %v4207_v61, %v3560_v58  ;;  %v3544_v15 = vld [vmem:[#allocation5 + $0x678] sm:$0xf0]  ;;  %v4235_v16 = vld [vmem:[#allocation5 + $0x76c] sm:$0xf] }
  0xfa   :  { %2064 = vmatpush.bf16.msrb.mxu1 %v3483_v19  ;;  %2030 = vmatmul.bf16.vlgmr.msra.gmra.mxu2 %v4502_v1  ;;  %v4175_v1 = vld [vmem:[#allocation5 + $0x58c] sm:$0xf]  ;;  %v3672_v19 = vld [vmem:[#allocation5 + $0x778] sm:$0xf0]  ;;  %v3547_v23 = vor.u32 %v4203_v13, %v3544_v15 }
  0xfb   :  { %2078 = vmatpush.bf16.msrb.mxu2 %v3611_v20  ;;  %2044 = vmatmul.bf16.vlgmr.msra.gmra.mxu3 %v4508_v17  ;;  %v4239_v17 = vld [vmem:[#allocation5 + $0x78c] sm:$0xf]  ;;  %v3435_v2 = vor.u32 %v4175_v1, %v3432_v60  ;;  %v4572_v20 = vld [vmem:[#allocation7] sm:$0xf]  ;;  %v3675_v27 = vor.u32 %v4235_v16, %v3672_v19  ;;  %v3384_v55 = vld [vmem:[#allocation5 + $0x538] sm:$0xf0] }
  0xfc   :  { %2092 = vmatpush.bf16.msrb.mxu3 %v3739_v24  ;;  %v3691_v11 = vor.u32 %v4239_v17, %v3688_v63  ;;  %v4135_v24 = vld [vmem:[#allocation5 + $0x44c] sm:$0xf]  ;;  %v370_v37 = vperm.slane %v4572_v20, 0  ;;  %v3512_v1 = vld [vmem:[#allocation5 + $0x638] sm:$0xf0]  ;;  %v371_v60 = vperm.slane %v4572_v20, 1  ;;  %v3259_v17 = vor.u32 %v4131_v50, %v3256_v51 }
  0xfd   :  { %2051 = vmatpush.bf16.msrb.mxu0 %v3339_v34  ;;  %v3528_v34 = vld [vmem:[#allocation5 + $0x658] sm:$0xf0]  ;;  %v3275_v40 = vor.u32 %v4135_v24, %v3272_v25  ;;  %v4195_v56 = vld [vmem:[#allocation5 + $0x62c] sm:$0xf]  ;;  %v1807_v25 = vpop.f32.mrf.mxu2 }
  0xfe   :  { %2065 = vmatpush.bf16.msrb.mxu1 %v3467_v35  ;;  %v4231_v35 = vld [vmem:[#allocation5 + $0x74c] sm:$0xf]  ;;  %v3531_v46 = vor.u32 %v4199_v31, %v3528_v34  ;;  %v3640_v58 = vld [vmem:[#allocation5 + $0x738] sm:$0xf0]  ;;  %v1780_v16 = vadd.f32 %v1779_v48, %v371_v60  ;;  %v3854_v48 = vld [vmem:[#allocation8 + $0xe0] sm:$0xf] }
  0xff   :  { %2079 = vmatpush.bf16.msrb.mxu2 %v3595_v36  ;;  %v3656_v36 = vld [vmem:[#allocation5 + $0x758] sm:$0xf0]  ;;  %v4227_v61 = vld [vmem:[#allocation5 + $0x72c] sm:$0xf] }
 0x100   :  { %2093 = vmatpush.bf16.msrb.mxu3 %v3723_v41  ;;  %v4577_v41 = vpop.f32.mrf.mxu3  ;;  %v4127_v63 = vld [vmem:[#allocation5 + $0x40c] sm:$0xf]  ;;  %v3496_v13 = vld [vmem:[#allocation5 + $0x618] sm:$0xf0] }
 0x101   :  { %2052 = vmatpush.bf16.msrb.mxu0 %v3323_v52  ;;  %v4163_v52 = vld [vmem:[#allocation5 + $0x52c] sm:$0xf]  ;;  %v3624_v19 = vld [vmem:[#allocation5 + $0x718] sm:$0xf0] }
 0x102   :  { %2066 = vmatpush.bf16.msrb.mxu1 %v3451_v53  ;;  %v1670_v53 = vadd.f32 %v4548_v45, %v370_v37  ;;  %v3240_v45 = vld [vmem:[#allocation5 + $0x418] sm:$0xf0]  ;;  %v4223_v15 = vld [vmem:[#allocation5 + $0x70c] sm:$0xf] }
 0x103   :  { %2080 = vmatpush.bf16.msrb.mxu2 %v3579_v54  ;;  %v3659_v54 = vor.u32 %v4231_v35, %v3656_v36  ;;  %v4285_v24 = vld [vmem:[#allocation8 + $0xf4] sm:$0xf0]  ;;  %v3627_v34 = vor.u32 %v4223_v15, %v3624_v19  ;;  %v4283_v50 = vld [vmem:[#allocation8 + $0xe4] sm:$0xf0]  ;;  %v3830_v15 = vld [vmem:[#allocation8 + $0xb0] sm:$0xf] }
 0x104   :  { %2094 = vmatpush.bf16.msrb.mxu3 %v3707_v59  ;;  %v1793_v59 = vpop.f32.mrf.mxu1  ;;  %v1684_v7 = vadd.f32 %v4550_v49, %v1670_v53  ;;  %v3499_v49 = vor.u32 %v4191_v12, %v3496_v13  ;;  %v3766_v12 = vld [vmem:[#allocation8 + $0x30] sm:$0xf]  ;;  %v4261_v13 = vld [vmem:[#allocation8 + $0x34] sm:$0xf0] }
 0x105   :  { %2053 = vmatpush.bf16.msrb.mxu0 %v3307_v10  ;;  %v1668_v10 = vadd.f32 %v4540_v3, %v370_v37  ;;  %v3243_v3 = vor.u32 %v4127_v63, %v3240_v45  ;;  %v1794_v36 = vadd.f32 %v1793_v59, %v1780_v16  ;;  %v4281_v59 = vld [vmem:[#allocation8 + $0xd4] sm:$0xf0] }
 0x106   :  { %2067 = vmatpush.bf16.msrb.mxu1 %v3435_v2  ;;  %v3387_v2 = vor.u32 %v4163_v52, %v3384_v55  ;;  %v1698_v31 = vadd.f32 %v4552_v14, %v1684_v7  ;;  %v3855_v55 = vor.u32 %v4283_v50, %v3854_v48  ;;  %v4277_v16 = vld [vmem:[#allocation8 + $0xb4] sm:$0xf0]  ;;  %v3814_v50 = vld [vmem:[#allocation8 + $0x90] sm:$0xf] }
 0x107   :  { %2081 = vmatpush.bf16.msrb.mxu2 %v3563_v4  ;;  %v3515_v4 = vor.u32 %v4195_v56, %v3512_v1  ;;  %v1682_v26 = vadd.f32 %v4542_v9, %v1668_v10  ;;  %v1808_v53 = vadd.f32 %v1807_v25, %v1794_v36  ;;  %v3782_v56 = vld [vmem:[#allocation8 + $0x50] sm:$0xf]  ;;  %v4265_v1 = vld [vmem:[#allocation8 + $0x54] sm:$0xf0]  ;;  %v3822_v25 = vld [vmem:[#allocation8 + $0xa0] sm:$0xf] }
 0x108   :  { %2095 = vmatpush.bf16.msrb.mxu3 %v3691_v11  ;;  %v3643_v11 = vor.u32 %v4227_v61, %v3640_v58  ;;  %v1821_v29 = vpop.f32.mrf.mxu3  ;;  %v1712_v52 = vadd.f32 %v4554_v18, %v1698_v31  ;;  %v3783_v18 = vor.u32 %v4265_v1, %v3782_v56  ;;  %v1809_v58 = vpop.f32.mrf.mxu2  ;;  %v4257_v48 = vld [vmem:[#allocation8 + $0x14] sm:$0xf0]  ;;  %v4255_v56 = vld [vmem:[#allocation8 + $0x4] sm:$0xf0] }
 0x109   :  { %2054 = vmatpush.bf16.msrb.mxu0 %v3291_v21  ;;  %v3798_v21 = vld [vmem:[#allocation8 + $0x70] sm:$0xf]  ;;  %v1696_v9 = vadd.f32 %v4544_v30, %v1682_v26 }
 0x10a   :  { %2068 = vmatpush.bf16.msrb.mxu1 %v3419_v22  ;;  %v4269_v22 = vld [vmem:[#allocation8 + $0x74] sm:$0xf0]  ;;  %v3846_v30 = vld [vmem:[#allocation8 + $0xd0] sm:$0xf] }
 0x10b   :  { %2082 = vmatpush.bf16.msrb.mxu2 %v3547_v23  ;;  %v3862_v23 = vld [vmem:[#allocation8 + $0xf0] sm:$0xf]  ;;  %v3799_v35 = vor.u32 %v4269_v22, %v3798_v21  ;;  %v1710_v61 = vadd.f32 %v4546_v32, %v1696_v9  ;;  %v3847_v63 = vor.u32 %v4281_v59, %v3846_v30  ;;  %v4273_v9 = vld [vmem:[#allocation8 + $0x94] sm:$0xf0] }
 0x10c   :  { %2096 = vmatpush.bf16.msrb.mxu3 %v3675_v27  ;;  %v3371_v27 = vor.u32 %v4159_v5, %v3368_v6  ;;  %v3863_v37 = vor.u32 %v4285_v24, %v3862_v23  ;;  %v1795_v51 = vpop.f32.mrf.mxu1  ;;  %v3831_v23 = vor.u32 %v4277_v16, %v3830_v15  ;;  %v3758_v24 = vld [vmem:[#allocation8 + $0x20] sm:$0xf]  ;;  %v3815_v59 = vor.u32 %v4273_v9, %v3814_v50  ;;  %v3856_v15 = vld [vmem:[#allocation8 + $0xe8] sm:$0xf0]  ;;  %v4291_v50 = vld [vmem:[#allocation8 + $0x124] sm:$0xf0] }
 0x10d   :  { %2055 = vmatpush.bf16.msrb.mxu0 %v3275_v40  ;;  %v1781_v40 = vpop.f32.mrf.mxu0  ;;  %v1724_v45 = vadd.f32 %v4556_v28, %v1710_v61  ;;  %v3767_v28 = vor.u32 %v4261_v13, %v3766_v12  ;;  %v3806_v61 = vld [vmem:[#allocation8 + $0x80] sm:$0xf]  ;;  %v4282_v13 = vld [vmem:[#allocation8 + $0xe4] sm:$0xf] }
 0x10e   :  { %2069 = vmatpush.bf16.msrb.mxu1 %v3403_v42  ;;  %v3790_v42 = vld [vmem:[#allocation8 + $0x60] sm:$0xf] }
 0x10f   :  { %2083 = vmatpush.bf16.msrb.mxu2 %v3531_v46  ;;  %v4267_v46 = vld [vmem:[#allocation8 + $0x64] sm:$0xf0]  ;;  %v1738_v19 = vadd.f32 %v4558_v33, %v1724_v45 }
 0x110   :  { %2097 = vmatpush.bf16.msrb.mxu3 %v3659_v54  ;;  %v3791_v14 = vor.u32 %v4267_v46, %v3790_v42  ;;  %v1782_v54 = vadd.f32 %v1781_v40, %v371_v60  ;;  %v1823_v10 = vpop.f32.mrf.mxu3  ;;  %v3750_v46 = vld [vmem:[#allocation8 + $0x10] sm:$0xf] }
 0x111   :  { %2056 = vmatpush.bf16.msrb.mxu0 %v3259_v17  ;;  %v1726_v17 = vadd.f32 %v4568_v0, %v1712_v52  ;;  %v1752_v31 = vadd.f32 %v4564_v57, %v1738_v19  ;;  %v3918_v52 = vld [vmem:[#allocation8 + $0x160] sm:$0xf] }
 0x112   :  { %2070 = vmatpush.bf16.msrb.mxu1 %v3387_v2  ;;  %v1796_v60 = vadd.f32 %v1795_v51, %v1782_v54  ;;  %v3774_v2 = vld [vmem:[#allocation8 + $0x40] sm:$0xf]  ;;  %v3751_v54 = vor.u32 %v4257_v48, %v3750_v46  ;;  %v3840_v46 = vld [vmem:[#allocation8 + $0xc8] sm:$0xf0] }
 0x113   :  { %2084 = vmatpush.bf16.msrb.mxu2 %v3515_v4  ;;  %v3838_v4 = vld [vmem:[#allocation8 + $0xc0] sm:$0xf]  ;;  %v1740_v6 = vadd.f32 %v4570_v8, %v1726_v17  ;;  %v4259_v8 = vld [vmem:[#allocation8 + $0x24] sm:$0xf0]  ;;  %v1766_v57 = vadd.f32 %v4566_v62, %v1752_v31  ;;  %v3784_v31 = vld [vmem:[#allocation8 + $0x58] sm:$0xf0] }
 0x114   :  { %2098 = vmatpush.bf16.msrb.mxu3 %v3643_v11  ;;  %v1810_v7 = vadd.f32 %v1809_v58, %v1796_v60  ;;  %v3759_v36 = vor.u32 %v4259_v8, %v3758_v24  ;;  %v4268_v58 = vld [vmem:[#allocation8 + $0x74] sm:$0xf]  ;;  %v3910_v60 = vld [vmem:[#allocation8 + $0x150] sm:$0xf]  ;;  %v3886_v48 = vld [vmem:[#allocation8 + $0x120] sm:$0xf] }
 0x115   :  { %2057 = vmatpush.bf16.msrb.mxu0 %v3243_v3  ;;  %v1835_v5 = vpop.f32.mrf.mxu0  ;;  %v1754_v21 = vadd.f32 %v4575_v38, %v1740_v6  ;;  %v2114_v62 = vmul.f32 0.2, %v1766_v57  ;;  %vm2106_vm1 = vcmp.gt.f32.partialorder %v1766_v57, 0.0 }
 0x116   :  { %2071 = vmatpush.bf16.msrb.mxu1 %v3371_v27  ;;  %v1824_v22 = vadd.f32 %v1823_v10, %v1810_v7  ;;  %v4275_v27 = vld [vmem:[#allocation8 + $0xa4] sm:$0xf0] }
 0x117   :  { %2085 = vmatpush.bf16.msrb.mxu2 %v3499_v49  ;;  %v3926_v49 = vld [vmem:[#allocation8 + $0x170] sm:$0xf]  ;;  %v3823_v42 = vor.u32 %v4275_v27, %v3822_v25  ;;  %v2122_v16 = vsel %vm2106_vm1, %v1766_v57, %v2114_v62  ;;  %v3768_v57 = vld [vmem:[#allocation8 + $0x38] sm:$0xf0] }
 0x118   :  { %2099 = vmatpush.bf16.msrb.mxu3 %v3627_v34  ;;  %2058 = vmatmul.bf16.vlgmr.msrb.gmra.mxu0 %v4512_v39  ;;  %v1822_v39 = vadd.f32 %v1821_v29, %v1808_v53  ;;  %v4301_v29 = vld [vmem:[#allocation8 + $0x174] sm:$0xf0]  ;;  %v1768_v34 = vadd.f32 %v4577_v41, %v1754_v21  ;;  %v3902_v21 = vld [vmem:[#allocation8 + $0x140] sm:$0xf]  ;;  %v3894_v25 = vld [vmem:[#allocation8 + $0x130] sm:$0xf] }
 0x119   :  { %2524 = vmatpush.bf16.msra.mxu0 %v3799_v35  ;;  %2072 = vmatmul.bf16.vlgmr.msrb.gmra.mxu1 %v4516_v44  ;;  %v4263_v44 = vld [vmem:[#allocation8 + $0x44] sm:$0xf0]  ;;  %v3927_v38 = vor.u32 %v4301_v29, %v3926_v49  ;;  %v3859_v49 = vor.u32 %v4282_v13, %v3856_v15  ;;  %v4264_v29 = vld [vmem:[#allocation8 + $0x54] sm:$0xf]  ;;  %v3928_v62 = vld [vmem:[#allocation8 + $0x178] sm:$0xf0] }
 0x11a   :  { %2538 = vmatpush.bf16.msra.mxu1 %v3863_v37  ;;  %2086 = vmatmul.bf16.vlgmr.msrb.gmra.mxu2 %v4514_v43  ;;  %v4279_v43 = vld [vmem:[#allocation8 + $0xc4] sm:$0xf0]  ;;  %v3775_v32 = vor.u32 %v4263_v44, %v3774_v2  ;;  %v1836_v0 = vadd.f32 %v1835_v5, %v1822_v39  ;;  %vm2110_vm0 = vcmp.gt.f32.partialorder %v1768_v34, 0.0  ;;  %v2118_v53 = vmul.f32 0.2, %v1768_v34 }
 0x11b   :  { %2100 = vmatmul.bf16.vlgmr.msrb.gmra.mxu3 %v4518_v47  ;;  %v1849_v47 = vpop.f32.mrf.mxu1  ;;  %v3839_v11 = vor.u32 %v4279_v43, %v3838_v4  ;;  %2552 = vmatpush.bf16.msra.mxu2 %v3927_v38  ;;  %v3800_v39 = vld [vmem:[#allocation8 + $0x78] sm:$0xf0]  ;;  %v4284_v44 = vld [vmem:[#allocation8 + $0xf4] sm:$0xf]  ;;  %v3787_v38 = vor.u32 %v4264_v29, %v3784_v31  ;;  %v4254_v15 = vld [vmem:[#allocation8 + $0x4] sm:$0xf] }
 0x11c   :  { %v1850_v3 = vadd.f32 %v1849_v47, %v1836_v0  ;;  %v3864_v4 = vld [vmem:[#allocation8 + $0xf8] sm:$0xf0]  ;;  %v2126_v45 = vsel %vm2110_vm0, %v1768_v34, %v2118_v53  ;;  %v3803_v7 = vor.u32 %v4268_v58, %v3800_v39  ;;  %v4266_v0 = vld [vmem:[#allocation8 + $0x64] sm:$0xf]  ;;  %v4280_v34 = vld [vmem:[#allocation8 + $0xd4] sm:$0xf] }
 0x11d   :  { %2525 = vmatpush.bf16.msra.mxu0 %v3791_v14  ;;  %v1863_v26 = vpop.f32.mrf.mxu2  ;;  %v1837_v33 = vpop.f32.mrf.mxu0  ;;  %v4299_v14 = vld [vmem:[#allocation8 + $0x164] sm:$0xf0]  ;;  %v3867_v12 = vor.u32 %v4284_v44, %v3864_v4  ;;  %v4289_v53 = vld [vmem:[#allocation8 + $0x114] sm:$0xf0]  ;;  %v3824_v58 = vld [vmem:[#allocation8 + $0xa8] sm:$0xf0] }
 0x11e   :  { %2539 = vmatpush.bf16.msra.mxu1 %v3855_v55  ;;  %v1877_v35 = vpop.f32.mrf.mxu3  ;;  %v1864_v37 = vadd.f32 %v1863_v26, %v1850_v3  ;;  %v1838_v40 = vadd.f32 %v1837_v33, %v1824_v22  ;;  %v3919_v41 = vor.u32 %v4299_v14, %v3918_v52  ;;  %v3742_v55 = vld [vmem:[#allocation8] sm:$0xf]  ;;  %v4295_v3 = vld [vmem:[#allocation8 + $0x144] sm:$0xf0]  ;;  %v4293_v26 = vld [vmem:[#allocation8 + $0x134] sm:$0xf0] }
 0x11f   :  { %v3743_v5 = vor.u32 %v4255_v56, %v3742_v55  ;;  %v3903_v8 = vor.u32 %v4295_v3, %v3902_v21  ;;  %v3848_v33 = vld [vmem:[#allocation8 + $0xd8] sm:$0xf0]  ;;  %v4260_v52 = vld [vmem:[#allocation8 + $0x34] sm:$0xf]  ;;  %v4287_v39 = vld [vmem:[#allocation8 + $0x104] sm:$0xf0] }
 0x120   :  { %v1878_v1 = vadd.f32 %v1877_v35, %v1864_v37  ;;  %2553 = vmatpush.bf16.msra.mxu2 %v3919_v41  ;;  %v3895_v35 = vor.u32 %v4293_v26, %v3894_v25  ;;  %v4262_v37 = vld [vmem:[#allocation8 + $0x44] sm:$0xf]  ;;  %v3878_v41 = vld [vmem:[#allocation8 + $0x110] sm:$0xf]  ;;  %v3832_v55 = vld [vmem:[#allocation8 + $0xb8] sm:$0xf0] }
 0x121   :  { %2526 = vmatpush.bf16.msra.mxu0 %v3783_v18  ;;  %v4271_v18 = vld [vmem:[#allocation8 + $0x84] sm:$0xf0]  ;;  %v3879_v56 = vor.u32 %v4289_v53, %v3878_v41  ;;  %v4256_v4 = vld [vmem:[#allocation8 + $0x14] sm:$0xf]  ;;  %v3808_v21 = vld [vmem:[#allocation8 + $0x88] sm:$0xf0] }
 0x122   :  { %2540 = vmatpush.bf16.msra.mxu1 %v3847_v63  ;;  %v4297_v63 = vld [vmem:[#allocation8 + $0x154] sm:$0xf0]  ;;  %v3807_v6 = vor.u32 %v4271_v18, %v3806_v61  ;;  %vm2107_vm2 = vcmp.gt.f32.partialorder %v1878_v1, 0.0  ;;  %v3760_v61 = vld [vmem:[#allocation8 + $0x28] sm:$0xf0] }
 0x123   :  { %v1851_v51 = vpop.f32.mrf.mxu1  ;;  %v3911_v43 = vor.u32 %v4297_v63, %v3910_v60  ;;  %v4274_v18 = vld [vmem:[#allocation8 + $0xa4] sm:$0xf]  ;;  %v4300_v63 = vld [vmem:[#allocation8 + $0x174] sm:$0xf]  ;;  %v3912_v3 = vld [vmem:[#allocation8 + $0x158] sm:$0xf0] }
 0x124   :  { %v1852_v30 = vadd.f32 %v1851_v51, %v1838_v40  ;;  %v3776_v40 = vld [vmem:[#allocation8 + $0x48] sm:$0xf0]  ;;  %v3887_v51 = vor.u32 %v4291_v50, %v3886_v48  ;;  %v3827_v44 = vor.u32 %v4274_v18, %v3824_v58  ;;  %v4294_v29 = vld [vmem:[#allocation8 + $0x144] sm:$0xf]  ;;  %v4288_v41 = vld [vmem:[#allocation8 + $0x114] sm:$0xf] }
 0x125   :  { %2527 = vmatpush.bf16.msra.mxu0 %v3775_v32  ;;  %v1865_v17 = vpop.f32.mrf.mxu2  ;;  %v2115_v32 = vmul.f32 0.2, %v1878_v1  ;;  %2554 = vmatpush.bf16.msra.mxu2 %v3911_v43  ;;  %v3779_v9 = vor.u32 %v4262_v37, %v3776_v40  ;;  %v3752_v43 = vld [vmem:[#allocation8 + $0x18] sm:$0xf0]  ;;  %v3904_v31 = vld [vmem:[#allocation8 + $0x148] sm:$0xf0] }
 0x126   :  { %2541 = vmatpush.bf16.msra.mxu1 %v3839_v11  ;;  %v1866_v10 = vadd.f32 %v1865_v17, %v1852_v30  ;;  %v1879_v2 = vpop.f32.mrf.mxu3  ;;  %v3792_v11 = vld [vmem:[#allocation8 + $0x68] sm:$0xf0]  ;;  %v3870_v17 = vld [vmem:[#allocation8 + $0x100] sm:$0xf]  ;;  %v3896_v37 = vld [vmem:[#allocation8 + $0x138] sm:$0xf0] }
 0x127   :  { %v3795_v22 = vor.u32 %v4266_v0, %v3792_v11  ;;  %v3871_v60 = vor.u32 %v4287_v39, %v3870_v17  ;;  %v372_v0 = vperm.slane %v4572_v20, 2  ;;  %v3755_v11 = vor.u32 %v4256_v4, %v3752_v43  ;;  %v4290_v48 = vld [vmem:[#allocation8 + $0x124] sm:$0xf]  ;;  %v3888_v50 = vld [vmem:[#allocation8 + $0x128] sm:$0xf0] }
 0x128   :  { %v1880_v47 = vadd.f32 %v1879_v2, %v1866_v10  ;;  %v3931_v2 = vor.u32 %v4300_v63, %v3928_v62  ;;  %v3880_v53 = vld [vmem:[#allocation8 + $0x118] sm:$0xf0] }
 0x129   :  { %2528 = vmatpush.bf16.msra.mxu0 %v3767_v28  ;;  %v4602_v28 = vpack.c.bf16 %v2126_v45, %v2122_v16  ;;  %2555 = vmatpush.bf16.msra.mxu2 %v3903_v8  ;;  %v3744_v16 = vld [vmem:[#allocation8 + $0x8] sm:$0xf0] }
 0x12a   :  { %2542 = vmatpush.bf16.msra.mxu1 %v3831_v23  ;;  %vm2111_vm3 = vcmp.gt.f32.partialorder %v1880_v47, 0.0  ;;  %v2119_v19 = vmul.f32 0.2, %v1880_v47  ;;  %v2123_v23 = vsel %vm2107_vm2, %v1878_v1, %v2115_v32  ;;  %v3771_v1 = vor.u32 %v4260_v52, %v3768_v57  ;;  %v3816_v32 = vld [vmem:[#allocation8 + $0x98] sm:$0xf0] }
 0x12c   :  { %v2127_v24 = vsel %vm2111_vm3, %v1880_v47, %v2119_v19  ;;  %v4270_v19 = vld [vmem:[#allocation8 + $0x84] sm:$0xf] }
 0x12d   :  { %2529 = vmatpush.bf16.msra.mxu0 %v3759_v36  ;;  %v4604_v27 = vpack.c.bf16 %v2127_v24, %v2123_v23  ;;  %v3851_v36 = vor.u32 %v4280_v34, %v3848_v33  ;;  %2556 = vmatpush.bf16.msra.mxu2 %v3895_v35  ;;  %v3747_v24 = vor.u32 %v4254_v15, %v3744_v16 }
 0x12e   :  { %2543 = vmatpush.bf16.msra.mxu1 %v3823_v42  ;;  %v4278_v42 = vld [vmem:[#allocation8 + $0xc4] sm:$0xf]  ;;  %v3811_v25 = vor.u32 %v4270_v19, %v3808_v21  ;;  %v3907_v35 = vor.u32 %v4294_v29, %v3904_v31  ;;  %v3958_v19 = vld [vmem:[#allocation8 + $0x1b0] sm:$0xf]  ;;  %v4309_v21 = vld [vmem:[#allocation8 + $0x1b4] sm:$0xf0] }
 0x12f   :  { %v3843_v14 = vor.u32 %v4278_v42, %v3840_v46  ;;  %v4307_v29 = vld [vmem:[#allocation8 + $0x1a4] sm:$0xf0] }
 0x131   :  { %2530 = vmatpush.bf16.msra.mxu0 %v3751_v54  ;;  %v4276_v54 = vld [vmem:[#allocation8 + $0xb4] sm:$0xf]  ;;  %2557 = vmatpush.bf16.msra.mxu2 %v3887_v51 }
 0x132   :  { %2544 = vmatpush.bf16.msra.mxu1 %v3815_v59  ;;  %v3835_v30 = vor.u32 %v4276_v54, %v3832_v55  ;;  %v4258_v59 = vld [vmem:[#allocation8 + $0x24] sm:$0xf]  ;;  %v3883_v55 = vor.u32 %v4288_v41, %v3880_v53  ;;  %v373_v53 = vperm.slane %v4572_v20, 3 }
 0x133   :  { %v3763_v10 = vor.u32 %v4258_v59, %v3760_v61  ;;  %v3990_v59 = vld [vmem:[#allocation8 + $0x1f0] sm:$0xf]  ;;  %v4317_v61 = vld [vmem:[#allocation8 + $0x1f4] sm:$0xf0] }
 0x134   :  { %v3991_v18 = vor.u32 %v4317_v61, %v3990_v59  ;;  %v4308_v59 = vld [vmem:[#allocation8 + $0x1b4] sm:$0xf]  ;;  %v3960_v61 = vld [vmem:[#allocation8 + $0x1b8] sm:$0xf0] }
 0x135   :  { %2531 = vmatpush.bf16.msra.mxu0 %v3743_v5  ;;  %2558 = vmatpush.bf16.msra.mxu2 %v3879_v56  ;;  %v1891_v45 = vpop.f32.mrf.mxu0  ;;  %v4272_v5 = vld [vmem:[#allocation8 + $0x94] sm:$0xf]  ;;  %v4286_v56 = vld [vmem:[#allocation8 + $0x104] sm:$0xf] }
 0x136   :  { %2545 = vmatpush.bf16.msra.mxu1 %v3807_v6  ;;  %v1905_v47 = vpop.f32.mrf.mxu1  ;;  %v4298_v6 = vld [vmem:[#allocation8 + $0x164] sm:$0xf]  ;;  %v3819_v13 = vor.u32 %v4272_v5, %v3816_v32  ;;  %v1892_v23 = vadd.f32 %v1891_v45, %v372_v0  ;;  %2566 = vmatpush.bf16.msra.mxu3 %v3991_v18  ;;  %v3974_v45 = vld [vmem:[#allocation8 + $0x1d0] sm:$0xf]  ;;  %v4313_v5 = vld [vmem:[#allocation8 + $0x1d4] sm:$0xf0]  ;;  %v3963_v18 = vor.u32 %v4308_v59, %v3960_v61 }
 0x138   :  { %2532 = vmatmul.bf16.vlgmr.msra.gmra.mxu0 %v4602_v28  ;;  %v1906_v34 = vadd.f32 %v1905_v47, %v1892_v23  ;;  %v3975_v47 = vor.u32 %v4313_v5, %v3974_v45  ;;  %v3944_v45 = vld [vmem:[#allocation8 + $0x198] sm:$0xf0] }
 0x139   :  { %2580 = vmatpush.bf16.msrb.mxu0 %v3803_v7  ;;  %2546 = vmatmul.bf16.vlgmr.msra.gmra.mxu1 %v4604_v27  ;;  %v3920_v7 = vld [vmem:[#allocation8 + $0x168] sm:$0xf0] }
 0x13a   :  { %2594 = vmatpush.bf16.msrb.mxu1 %v3867_v12  ;;  %2559 = vmatpush.bf16.msra.mxu2 %v3871_v60  ;;  %v3923_v12 = vor.u32 %v4298_v6, %v3920_v7 }
 0x13d   :  { %2581 = vmatpush.bf16.msrb.mxu0 %v3795_v22  ;;  %v4296_v22 = vld [vmem:[#allocation8 + $0x154] sm:$0xf]  ;;  %v1919_v26 = vpop.f32.mrf.mxu2  ;;  %v1893_v33 = vpop.f32.mrf.mxu0 }
 0x13e   :  { %2595 = vmatpush.bf16.msrb.mxu1 %v3859_v49  ;;  %2608 = vmatpush.bf16.msrb.mxu2 %v3931_v2  ;;  %v3915_v8 = vor.u32 %v4296_v22, %v3912_v3  ;;  %v1933_v49 = vpop.f32.mrf.mxu3  ;;  %v1920_v40 = vadd.f32 %v1919_v26, %v1906_v34  ;;  %v1894_v42 = vadd.f32 %v1893_v33, %v372_v0  ;;  %v4315_v2 = vld [vmem:[#allocation8 + $0x1e4] sm:$0xf0]  ;;  %v3942_v34 = vld [vmem:[#allocation8 + $0x190] sm:$0xf]  ;;  %v4305_v33 = vld [vmem:[#allocation8 + $0x194] sm:$0xf0] }
 0x140   :  { %v1934_v52 = vadd.f32 %v1933_v49, %v1920_v40  ;;  %v3950_v49 = vld [vmem:[#allocation8 + $0x1a0] sm:$0xf]  ;;  %v4316_v40 = vld [vmem:[#allocation8 + $0x1f4] sm:$0xf] }
 0x141   :  { %2582 = vmatpush.bf16.msrb.mxu0 %v3787_v38  ;;  %v1907_v38 = vpop.f32.mrf.mxu1  ;;  %v3951_v31 = vor.u32 %v4307_v29, %v3950_v49 }
 0x142   :  { %2596 = vmatpush.bf16.msrb.mxu1 %v3851_v36  ;;  %2609 = vmatpush.bf16.msrb.mxu2 %v3923_v12  ;;  %v4292_v36 = vld [vmem:[#allocation8 + $0x134] sm:$0xf]  ;;  %v4311_v12 = vld [vmem:[#allocation8 + $0x1c4] sm:$0xf0] }
 0x143   :  { %v3899_v46 = vor.u32 %v4292_v36, %v3896_v37  ;;  %v4303_v36 = vld [vmem:[#allocation8 + $0x184] sm:$0xf0] }
 0x145   :  { %2583 = vmatpush.bf16.msrb.mxu0 %v3779_v9  ;;  %v1921_v51 = vpop.f32.mrf.mxu2  ;;  %v3891_v9 = vor.u32 %v4290_v48, %v3888_v50  ;;  %v4314_v48 = vld [vmem:[#allocation8 + $0x1e4] sm:$0xf]  ;;  %v3984_v50 = vld [vmem:[#allocation8 + $0x1e8] sm:$0xf0] }
 0x146   :  { %2597 = vmatpush.bf16.msrb.mxu1 %v3843_v14  ;;  %2610 = vmatpush.bf16.msrb.mxu2 %v3915_v8  ;;  %v1908_v14 = vadd.f32 %v1907_v38, %v1894_v42  ;;  %v1935_v57 = vpop.f32.mrf.mxu3  ;;  %v3934_v38 = vld [vmem:[#allocation8 + $0x180] sm:$0xf]  ;;  %v3992_v42 = vld [vmem:[#allocation8 + $0x1f8] sm:$0xf0] }
 0x147   :  { %v3935_v37 = vor.u32 %v4303_v36, %v3934_v38 }
 0x149   :  { %2584 = vmatpush.bf16.msrb.mxu0 %v3771_v1  ;;  %v1922_v1 = vadd.f32 %v1921_v51, %v1908_v14  ;;  %v3987_v51 = vor.u32 %v4314_v48, %v3984_v50  ;;  %v3976_v14 = vld [vmem:[#allocation8 + $0x1d8] sm:$0xf0] }
 0x14a   :  { %2598 = vmatpush.bf16.msrb.mxu1 %v3835_v30  ;;  %2611 = vmatpush.bf16.msrb.mxu2 %v3907_v35  ;;  %v3943_v35 = vor.u32 %v4305_v33, %v3942_v34 }
 0x14b   :  { %v1936_v17 = vadd.f32 %v1935_v57, %v1922_v1 }
 0x14d   :  { %2585 = vmatpush.bf16.msrb.mxu0 %v3763_v10  ;;  %v3982_v10 = vld [vmem:[#allocation8 + $0x1e0] sm:$0xf] }
 0x14e   :  { %2599 = vmatpush.bf16.msrb.mxu1 %v3827_v44  ;;  %2612 = vmatpush.bf16.msrb.mxu2 %v3899_v46  ;;  %v3983_v43 = vor.u32 %v4315_v2, %v3982_v10  ;;  %v3995_v46 = vor.u32 %v4316_v40, %v3992_v42 }
 0x150   :  { %2567 = vmatpush.bf16.msra.mxu3 %v3983_v43  ;;  %v4304_v43 = vld [vmem:[#allocation8 + $0x194] sm:$0xf] }
 0x151   :  { %2586 = vmatpush.bf16.msrb.mxu0 %v3755_v11  ;;  %v3966_v11 = vld [vmem:[#allocation8 + $0x1c0] sm:$0xf]  ;;  %v3947_v5 = vor.u32 %v4304_v43, %v3944_v45 }
 0x152   :  { %2600 = vmatpush.bf16.msrb.mxu1 %v3819_v13  ;;  %2613 = vmatpush.bf16.msrb.mxu2 %v3891_v9  ;;  %v3967_v16 = vor.u32 %v4311_v12, %v3966_v11  ;;  %v3936_v11 = vld [vmem:[#allocation8 + $0x188] sm:$0xf0] }
 0x154   :  { %2568 = vmatpush.bf16.msra.mxu3 %v3975_v47 }
 0x155   :  { %2587 = vmatpush.bf16.msrb.mxu0 %v3747_v24  ;;  %v1947_v54 = vpop.f32.mrf.mxu0  ;;  %v3959_v24 = vor.u32 %v4309_v21, %v3958_v19 }
 0x156   :  { %2601 = vmatpush.bf16.msrb.mxu1 %v3811_v25  ;;  %v1948_v30 = vadd.f32 %v1947_v54, %v1934_v52  ;;  %2614 = vmatpush.bf16.msrb.mxu2 %v3883_v55  ;;  %v4312_v52 = vld [vmem:[#allocation8 + $0x1d4] sm:$0xf]  ;;  %v4310_v54 = vld [vmem:[#allocation8 + $0x1c4] sm:$0xf] }
 0x157   :  { %v3979_v41 = vor.u32 %v4312_v52, %v3976_v14 }
 0x158   :  { %2588 = vmatmul.bf16.vlgmr.msrb.gmra.mxu0 %v4602_v28  ;;  %v1961_v28 = vpop.f32.mrf.mxu1  ;;  %2569 = vmatpush.bf16.msra.mxu3 %v3967_v16 }
 0x159   :  { %2602 = vmatmul.bf16.vlgmr.msrb.gmra.mxu1 %v4604_v27  ;;  %v3872_v27 = vld [vmem:[#allocation8 + $0x108] sm:$0xf0]  ;;  %v1962_v39 = vadd.f32 %v1961_v28, %v1948_v30 }
 0x15a   :  { %v3875_v58 = vor.u32 %v4286_v56, %v3872_v27  ;;  %v3968_v28 = vld [vmem:[#allocation8 + $0x1c8] sm:$0xf0] }
 0x15b   :  { %v3971_v56 = vor.u32 %v4310_v54, %v3968_v28 }
 0x15c   :  { %2615 = vmatpush.bf16.msrb.mxu2 %v3875_v58  ;;  %2570 = vmatpush.bf16.msra.mxu3 %v3959_v24 }
 0x15d   :  { %v1975_v60 = vpop.f32.mrf.mxu2  ;;  %v1949_v63 = vpop.f32.mrf.mxu0 }
 0x15e   :  { %v1989_v62 = vpop.f32.mrf.mxu3  ;;  %v1976_v44 = vadd.f32 %v1975_v60, %v1962_v39  ;;  %v1950_v4 = vadd.f32 %v1949_v63, %v1936_v17  ;;  %v4306_v60 = vld [vmem:[#allocation8 + $0x1a4] sm:$0xf]  ;;  %v3952_v63 = vld [vmem:[#allocation8 + $0x1a8] sm:$0xf0] }
 0x160   :  { %v1963_v32 = vpop.f32.mrf.mxu1  ;;  %v1990_v6 = vadd.f32 %v1989_v62, %v1976_v44  ;;  %2571 = vmatpush.bf16.msra.mxu3 %v3951_v31  ;;  %v3955_v62 = vor.u32 %v4306_v60, %v3952_v63 }
 0x161   :  { %v1964_v7 = vadd.f32 %v1963_v32, %v1950_v4 }
 0x162   :  { %v2116_v22 = vmul.f32 0.2, %v1990_v6  ;;  %vm2108_vm4 = vcmp.gt.f32.partialorder %v1990_v6, 0.0 }
 0x164   :  { %v2124_v8 = vsel %vm2108_vm4, %v1990_v6, %v2116_v22  ;;  %2572 = vmatpush.bf16.msra.mxu3 %v3943_v35 }
 0x165   :  { %v1977_v0 = vpop.f32.mrf.mxu2 }
 0x166   :  { %v1978_v13 = vadd.f32 %v1977_v0, %v1964_v7  ;;  %v1991_v15 = vpop.f32.mrf.mxu3  ;;  %v4302_v0 = vld [vmem:[#allocation8 + $0x184] sm:$0xf] }
 0x167   :  { %v3939_v12 = vor.u32 %v4302_v0, %v3936_v11 }
 0x168   :  { %v1992_v3 = vadd.f32 %v1991_v15, %v1978_v13  ;;  %2573 = vmatpush.bf16.msra.mxu3 %v3935_v37 }
 0x16a   :  { %vm2112_vm5 = vcmp.gt.f32.partialorder %v1992_v3, 0.0  ;;  %v2120_v23 = vmul.f32 0.2, %v1992_v3 }
 0x16c   :  { %v2128_v25 = vsel %vm2112_vm5, %v1992_v3, %v2120_v23  ;;  %2622 = vmatpush.bf16.msrb.mxu3 %v3995_v46  ;;  %v2198_v46 = vld [vmem:[%s4633_s4] sm:$0x3] }
 0x16d   :  { %v2132_v26 = vpack.c.bf16 %v2128_v25, %v2124_v8 }
 0x16f   :  { %2560 = vmatmul.bf16.vlgmr.msra.gmra.mxu2 %v2132_v26 }
 0x170   :  { %2623 = vmatpush.bf16.msrb.mxu3 %v3987_v51  ;;  %v2200_v51 = vperm.slane %v2198_v46, 0 }
 0x174   :  { %2624 = vmatpush.bf16.msrb.mxu3 %v3979_v41 }
 0x175   :  { %v2003_v9 = vpop.f32.mrf.mxu0 }
 0x176   :  { %v2017_v57 = vpop.f32.mrf.mxu1  ;;  %v2004_v1 = vadd.f32 %v2003_v9, %v373_v53 }
 0x178   :  { %2625 = vmatpush.bf16.msrb.mxu3 %v3971_v56  ;;  %v2018_v58 = vadd.f32 %v2017_v57, %v2004_v1  ;;  %v2201_v57 = vperm.slane %v2198_v46, 1 }
 0x17c   :  { %2626 = vmatpush.bf16.msrb.mxu3 %v3963_v18 }
 0x17d   :  { %v2031_v55 = vpop.f32.mrf.mxu2  ;;  %v2005_v27 = vpop.f32.mrf.mxu0 }
 0x17e   :  { %v2045_v30 = vpop.f32.mrf.mxu3  ;;  %v2019_v17 = vpop.f32.mrf.mxu1  ;;  %v2006_v39 = vadd.f32 %v2005_v27, %v373_v53  ;;  %v2032_v20 = vadd.f32 %v2031_v55, %v2018_v58 }
 0x17f   :  { %2616 = vmatmul.bf16.vlgmr.msrb.gmra.mxu2 %v2132_v26 }
 0x180   :  { %2627 = vmatpush.bf16.msrb.mxu3 %v3955_v62  ;;  %v2020_v2 = vadd.f32 %v2019_v17, %v2006_v39  ;;  %v2046_v32 = vadd.f32 %v2045_v30, %v2032_v20  ;;  %v2648_v17 = vld [vmem:[%s4634_s5] sm:$0x3] }
 0x181   :  { %v2650_v20 = vperm.slane %v2648_v17, 0 }
 0x184   :  { %2628 = vmatpush.bf16.msrb.mxu3 %v3947_v5 }
 0x185   :  { %v2033_v10 = vpop.f32.mrf.mxu2 }
 0x186   :  { %v2047_v44 = vpop.f32.mrf.mxu3  ;;  %v2034_v6 = vadd.f32 %v2033_v10, %v2020_v2  ;;  %v2651_v10 = vperm.slane %v2648_v17, 1 }
 0x188   :  { %2629 = vmatpush.bf16.msrb.mxu3 %v3939_v12  ;;  %v2048_v15 = vadd.f32 %v2047_v44, %v2034_v6 }
 0x195   :  { %v2059_v4 = vpop.f32.mrf.mxu0 }
 0x196   :  { %v2073_v47 = vpop.f32.mrf.mxu1  ;;  %v2060_v7 = vadd.f32 %v2059_v4, %v2046_v32 }
 0x198   :  { %v2074_v16 = vadd.f32 %v2073_v47, %v2060_v7 }
 0x19d   :  { %v2087_v13 = vpop.f32.mrf.mxu2  ;;  %v2061_v21 = vpop.f32.mrf.mxu0 }
 0x19e   :  { %v2101_v19 = vpop.f32.mrf.mxu3  ;;  %v2088_v22 = vadd.f32 %v2087_v13, %v2074_v16  ;;  %v2062_v3 = vadd.f32 %v2061_v21, %v2048_v15  ;;  %v2075_v23 = vpop.f32.mrf.mxu1 }
 0x1a0   :  { %v2102_v24 = vadd.f32 %v2101_v19, %v2088_v22  ;;  %v2076_v8 = vadd.f32 %v2075_v23, %v2062_v3  ;;  %v2665_v23 = vstv %s4635_s6 }
 0x1a2   :  { %v2117_v29 = vmul.f32 0.2, %v2102_v24  ;;  %vm2109_vm6 = vcmp.gt.f32.partialorder %v2102_v24, 0.0 }
 0x1a4   :  { %v2125_v33 = vsel %vm2109_vm6, %v2102_v24, %v2117_v29 }
 0x1a5   :  { %v2089_v25 = vpop.f32.mrf.mxu2 }
 0x1a6   :  { %v2090_v26 = vadd.f32 %v2089_v25, %v2076_v8  ;;  %v2103_v49 = vpop.f32.mrf.mxu3 }
 0x1a8   :  { %v2104_v31 = vadd.f32 %v2103_v49, %v2090_v26 }
 0x1aa   :  { %vm2113_vm7 = vcmp.gt.f32.partialorder %v2104_v31, 0.0  ;;  %v2121_v34 = vmul.f32 0.2, %v2104_v31 }
 0x1ac   :  { %v2129_v35 = vsel %vm2113_vm7, %v2104_v31, %v2121_v34 }
 0x1ad   :  { %v2133_v38 = vpack.c.bf16 %v2129_v35, %v2125_v33 }
 0x1af   :  { %2574 = vmatmul.bf16.vlgmr.msra.gmra.mxu3 %v2133_v38 }
 0x1b5   :  { %v2533_v36 = vpop.f32.mrf.mxu0 }
 0x1b6   :  { %v2547_v40 = vpop.f32.mrf.mxu1  ;;  %v2534_v14 = vadd.f32 %v2533_v36, %v2200_v51 }
 0x1b8   :  { %v2548_v41 = vadd.f32 %v2547_v40, %v2534_v14 }
 0x1bd   :  { %v2535_v42 = vpop.f32.mrf.mxu0 }
 0x1be   :  { %v2549_v9 = vpop.f32.mrf.mxu1  ;;  %v2536_v30 = vadd.f32 %v2535_v42, %v2200_v51 }
 0x1bf   :  { %2630 = vmatmul.bf16.vlgmr.msrb.gmra.mxu3 %v2133_v38 }
 0x1c0   :  { %v2550_v61 = vadd.f32 %v2549_v9, %v2536_v30 }
 0x1d5   :  { %v2589_v52 = vpop.f32.mrf.mxu0 }
 0x1d6   :  { %v2590_v54 = vadd.f32 %v2589_v52, %v2201_v57  ;;  %v2603_v55 = vpop.f32.mrf.mxu1 }
 0x1d8   :  { %v2604_v27 = vadd.f32 %v2603_v55, %v2590_v54 }
 0x1dd   :  { %v2591_v59 = vpop.f32.mrf.mxu0 }
 0x1de   :  { %v2592_v60 = vadd.f32 %v2591_v59, %v2201_v57  ;;  %v2605_v43 = vpop.f32.mrf.mxu1 }
 0x1e0   :  { %v2606_v5 = vadd.f32 %v2605_v43, %v2592_v60 }
 0x1f2   :  { %v2561_v37 = vpop.f32.mrf.mxu2 }
 0x1f3   :  { %v2562_v28 = vadd.f32 %v2561_v37, %v2548_v41 }
 0x1fa   :  { %v2563_v48 = vpop.f32.mrf.mxu2 }
 0x1fb   :  { %v2564_v63 = vadd.f32 %v2563_v48, %v2550_v61 }
 0x202   :  { %v2617_v56 = vpop.f32.mrf.mxu2 }
 0x203   :  { %v2618_v18 = vadd.f32 %v2617_v56, %v2604_v27 }
 0x20a   :  { %v2619_v45 = vpop.f32.mrf.mxu2 }
 0x20b   :  { %v2620_v7 = vadd.f32 %v2619_v45, %v2606_v5 }
 0x232   :  { %v2575_v50 = vpop.f32.mrf.mxu3 }
 0x233   :  { %v2576_v1 = vadd.f32 %v2575_v50, %v2562_v28 }
 0x235   :  { %v2640_v58 = vmul.f32 0.2, %v2576_v1  ;;  %vm2636_vm8 = vcmp.gt.f32.partialorder %v2576_v1, 0.0 }
 0x237   :  { %v2644_v4 = vsel %vm2636_vm8, %v2576_v1, %v2640_v58 }
 0x238   :  { %v2654_v47 = vmul.f32 %v2650_v20, %v2644_v4 }
 0x23a   :  { %v2577_v53 = vpop.f32.mrf.mxu3 }
 0x23b   :  { %v2578_v2 = vadd.f32 %v2577_v53, %v2564_v63 }
 0x23d   :  { %v2642_v0 = vmul.f32 0.2, %v2578_v2  ;;  %vm2638_vm10 = vcmp.gt.f32.partialorder %v2578_v2, 0.0 }
 0x23f   :  { %v2646_v16 = vsel %vm2638_vm10, %v2578_v2, %v2642_v0 }
 0x240   :  { %v2656_v21 = vmul.f32 %v2650_v20, %v2646_v16 }
 0x242   :  { %v2631_v39 = vpop.f32.mrf.mxu3 }
 0x243   :  { %v2632_v62 = vadd.f32 %v2631_v39, %v2618_v18 }
 0x245   :  { %vm2637_vm9 = vcmp.gt.f32.partialorder %v2632_v62, 0.0  ;;  %v2641_v44 = vmul.f32 0.2, %v2632_v62 }
 0x247   :  { %v2645_v32 = vsel %vm2637_vm9, %v2632_v62, %v2641_v44 }
 0x248   :  { %v2655_v6 = vmul.f32 %v2651_v10, %v2645_v32 }
 0x24a   :  { %v2633_v11 = vpop.f32.mrf.mxu3  ;;  %v2658_v12 = vadd.f32 %v2655_v6, %v2654_v47 }
 0x24b   :  { %v2634_v13 = vadd.f32 %v2633_v11, %v2620_v7 }
 0x24c   :  { %2659 = vadd.xlane.f32.xlu0 %v2658_v12 }
 0x24d   :  { %vm2639_vm11 = vcmp.gt.f32.partialorder %v2634_v13, 0.0  ;;  %v2643_v15 = vmul.f32 0.2, %v2634_v13 }
 0x24f   :  { %v2647_v19 = vsel %vm2639_vm11, %v2634_v13, %v2643_v15 }
 0x250   :  { %v2657_v22 = vmul.f32 %v2651_v10, %v2647_v19 }
 0x252   :  { %v2661_v3 = vadd.f32 %v2657_v22, %v2656_v21 }
 0x254   :  { %2662 = vadd.xlane.f32.xlu0 %v2661_v3 }
 0x2bf   :  { %v2660_v24 = vpop.xlane.xlu0 %2659 }
 0x2c0   :  { %v2666_v8 = vadd.f32 %v2665_v23, %v2660_v24 }
 0x2c2   :  { %v3996_v25 = vmul.f32 -1.442695, %v2666_v8 }
 0x2c4   :  { %4328 = vpow2.f32 %v3996_v25 }
 0x2c7   :  { %v2663_v26 = vpop.xlane.xlu0 %2662 }
 0x2c8   :  { %v2667_v49 = vadd.f32 %v2665_v23, %v2663_v26 }
 0x2ca   :  { %v4329_v29 = vpop.eup %4328  ;;  %v3997_v31 = vmul.f32 -1.442695, %v2667_v49 }
 0x2cb   :  { %v2674_v34 = vadd.f32 1.0, %v4329_v29 }
 0x2cc   :  { %4330 = vpow2.f32 %v3997_v31 }
 0x2cd   :  { %4332 = vrcp.f32 %v2674_v34  ;;  %v2687_v40 = vand.u32 2147483648, %v2674_v34  ;;  %v2685_v46 = vand.u32 2147483647, %v2674_v34  ;;  %vm2681_vm13 = vweird.f32 %v2674_v34 }
 0x2cf   :  { %v2688_v51 = vor.u32 1.1754944e-38, %v2687_v40  ;;  %vm2686_vm0 = vcmp.eq.f32.partialorder %v2685_v46, 8.507059e+37 }
 0x2d2   :  { %v4331_v33 = vpop.eup %4330 }
 0x2d3   :  { %v4333_v35 = vpop.eup %4332  ;;  %v2675_v38 = vadd.f32 1.0, %v4331_v33 }
 0x2d4   :  { %v2677_v36 = vmul.f32 %v4333_v35, %v2674_v34  ;;  %vm2682_vm12 = vweird.f32 %v4333_v35 }
 0x2d5   :  { %4334 = vrcp.f32 %v2675_v38  ;;  %vm2683_vm15 = vmor %vm2681_vm13, %vm2682_vm12  ;;  %v2702_v41 = vand.u32 2147483648, %v2675_v38  ;;  %v2700_v54 = vand.u32 2147483647, %v2675_v38  ;;  %vm2696_vm2 = vweird.f32 %v2675_v38 }
 0x2d6   :  { %v2678_v37 = vsub.f32 1.0, %v2677_v36 }
 0x2d7   :  { %v2703_v55 = vor.u32 1.1754944e-38, %v2702_v41  ;;  %vm2701_vm4 = vcmp.eq.f32.partialorder %v2700_v54, 8.507059e+37 }
 0x2d8   :  { %v2679_v42 = vmul.f32 %v4333_v35, %v2678_v37 }
 0x2da   :  { %v2680_v48 = vadd.f32 %v4333_v35, %v2679_v42 }
 0x2db   :  { %v4335_v50 = vpop.eup %4334 }
 0x2dc   :  { %v2684_v9 = vsel %vm2683_vm15, %v4333_v35, %v2680_v48  ;;  %v2692_v52 = vmul.f32 %v4335_v50, %v2675_v38  ;;  %vm2697_vm1 = vweird.f32 %v4335_v50 }
 0x2dd   :  { %v2689_v14 = vsel %vm2686_vm0, %v2688_v51, %v2684_v9  ;;  %vm2698_vm3 = vmor %vm2696_vm2, %vm2697_vm1 }
 0x2de   :  { %2707 = vst.msk [vmem:[%s4636_s7] sm:$0xff] %vm2706_vm14, %v2689_v14  ;;  %v2693_v57 = vsub.f32 1.0, %v2692_v52 }
 0x2e0   :  { %v2694_v53 = vmul.f32 %v4335_v50, %v2693_v57 }
 0x2e2   :  { %v2695_v28 = vadd.f32 %v4335_v50, %v2694_v53 }
 0x2e4   :  { %v2699_v56 = vsel %vm2698_vm3, %v4335_v50, %v2695_v28 }
 0x2e5   :  { %v2704_v1 = vsel %vm2701_vm4, %v2703_v55, %v2699_v56 }
 0x2e6   :  { %2708 = vst.msk [vmem:[%s4636_s7 + $0x8] sm:$0xff] %vm2706_vm14, %v2704_v1 }
 0x2e7   :  { %2713 = vsyncpa [#allocation4], 1 }
 0x2e8   :  { %2714 = vsyncpa [#allocation6], 1 }
 0x2e9   :  { %2715 = vsyncpa [#allocation9], 1 }

</bundles_post_ra>
